<compile_context>
chip_gen: v6e
topology: v6e:2x2x1
jax: 0.10.0
libtpu: 0.0.40
codegen_flags: <defaults>
</compile_context>

<pallas_src>
import math
import functools

import jax
import jax.numpy as jnp
from jax import lax
from jax.experimental import pallas as pl
from jax.experimental.pallas import tpu as pltpu

LN_EPS = 1e-5
NEG_BIG = -1e30  # large-negative causal fill (avoids -inf - -inf NaNs)


def _layernorm(h, w, b):
    mu = jnp.mean(h, axis=-1, keepdims=True)
    var = jnp.mean((h - mu) ** 2, axis=-1, keepdims=True)
    return (h - mu) * lax.rsqrt(var + LN_EPS) * w + b


def _gelu_exact(x):
    # nn.GELU() default: exact erf-based gelu
    return 0.5 * x * (1.0 + lax.erf(x * (1.0 / math.sqrt(2.0))))


def _block_kernel(n_heads,
                  x_q_ref, x_kv_ref, ln1w_ref, ln1b_ref,
                  wq_ref, wkv_ref, wo_ref, bo_ref,
                  ln2w_ref, ln2b_ref, w1_ref, b1_ref, w2_ref, b2_ref,
                  o_ref,
                  q_scr, m_scr, l_scr, acc_scr):
    qi = pl.program_id(1)
    ki = pl.program_id(2)
    nk = pl.num_programs(2)

    TQ = x_q_ref.shape[1]
    TK = x_kv_ref.shape[1]
    C = x_q_ref.shape[2]
    hs = C // n_heads
    scale = 1.0 / math.sqrt(hs)

    # ---- once per (batch, query tile): project Q, reset online-softmax state
    @pl.when(ki == 0)
    def _init():
        h1q = _layernorm(x_q_ref[0], ln1w_ref[0], ln1b_ref[0])
        q = jnp.dot(h1q.astype(jnp.bfloat16), wq_ref[...],
                    preferred_element_type=jnp.float32)
        q_scr[...] = (q * scale).astype(jnp.bfloat16)          # pre-scaled Q
        m_scr[...] = jnp.full_like(m_scr, NEG_BIG)
        l_scr[...] = jnp.zeros_like(l_scr)
        acc_scr[...] = jnp.zeros_like(acc_scr)

    # ---- kv blocks entirely above the causal diagonal are skipped
    @pl.when(ki * TK < (qi + 1) * TQ)
    def _attend():
        h1k = _layernorm(x_kv_ref[0], ln1w_ref[0], ln1b_ref[0])
        kv = jnp.dot(h1k.astype(jnp.bfloat16), wkv_ref[...],
                     preferred_element_type=jnp.float32)        # (TK, 2C)
        kvb = kv.astype(jnp.bfloat16)

        rows = qi * TQ + lax.broadcasted_iota(jnp.int32, (TQ, TK), 0)
        cols = ki * TK + lax.broadcasted_iota(jnp.int32, (TQ, TK), 1)
        visible = cols <= rows                                  # (TQ, TK)

        q = q_scr[...]                                          # (TQ, C) bf16
        for h in range(n_heads):                                # static unroll
            qh = q[:, h * hs:(h + 1) * hs]                      # (TQ, hs)
            kh = kvb[:, h * hs:(h + 1) * hs]                    # (TK, hs)
            vh = kvb[:, C + h * hs:C + (h + 1) * hs]            # (TK, hs)

            s = lax.dot_general(qh, kh, (((1,), (1,)), ((), ())),
                                preferred_element_type=jnp.float32)  # (TQ, TK)
            s = jnp.where(visible, s, NEG_BIG)

            m_prev = m_scr[h]                                   # (TQ, 1)
            m_new = jnp.maximum(m_prev, jnp.max(s, axis=-1, keepdims=True))
            alpha = jnp.exp(m_prev - m_new)
            p = jnp.exp(s - m_new)
            l_scr[h] = alpha * l_scr[h] + jnp.sum(p, axis=-1, keepdims=True)
            acc_scr[h] = alpha * acc_scr[h] + jnp.dot(
                p.astype(jnp.bfloat16), vh, preferred_element_type=jnp.float32)
            m_scr[h] = m_new

    # ---- once per (batch, query tile): finish attention, residuals, MLP
    @pl.when(ki == nk - 1)
    def _finalize():
        x_q = x_q_ref[0]                                        # (TQ, C) f32

        # Per-head normalized output pushed directly through its slice of the
        # output projection (no lane-axis concatenate).
        attn_proj = jnp.zeros((TQ, C), jnp.float32)
        for h in range(n_heads):
            head_out = acc_scr[h] * pl.reciprocal(l_scr[h], approx=True)
            attn_proj = attn_proj + jnp.dot(
                head_out.astype(jnp.bfloat16),
                wo_ref[pl.ds(h * hs, hs), :],
                preferred_element_type=jnp.float32)
        x2 = x_q + attn_proj + bo_ref[0]                        # residual 1

        h2 = _layernorm(x2, ln2w_ref[0], ln2b_ref[0])
        m1 = jnp.dot(h2.astype(jnp.bfloat16), w1_ref[...],
                     preferred_element_type=jnp.float32) + b1_ref[0]
        m1 = _gelu_exact(m1)
        y = jnp.dot(m1.astype(jnp.bfloat16), w2_ref[...],
                    preferred_element_type=jnp.float32) + b2_ref[0]

        o_ref[0] = (x2 + y).astype(o_ref.dtype)                 # residual 2


def block_forward(x, params, n_heads, *, q_tile=None, kv_tile=None):
    """x: (B, T, C) float32. Returns (B, T, C) float32."""
    B, T, C = x.shape
    H = 4 * C
    TQ = q_tile or min(T, 256)
    TK = kv_tile or min(T, 256)
    assert T % TQ == 0 and T % TK == 0 and C % n_heads == 0
    hs = C // n_heads

    # bf16 weights: half the DMA / VMEM footprint, feed the MXU at full rate.
    bf = lambda a: a.astype(jnp.bfloat16)
    wq = bf(params["wq"])
    wkv = bf(jnp.concatenate([params["wk"], params["wv"]], axis=1))  # (C, 2C)
    wo = bf(params["wo"])
    w1 = bf(params["w1"])
    w2 = bf(params["w2"])

    const = lambda shape: pl.BlockSpec(shape, lambda b, qi, ki: (0, 0))

    grid = (B, T // TQ, T // TK)
    in_specs = [
        pl.BlockSpec((1, TQ, C), lambda b, qi, ki: (b, qi, 0)),   # x (query rows)
        pl.BlockSpec((1, TK, C), lambda b, qi, ki: (b, ki, 0)),   # x (kv rows)
        const((1, C)), const((1, C)),                             # ln1 w, b
        const((C, C)),                                            # wq
        const((C, 2 * C)),                                        # w_kv fused
        const((C, C)), const((1, C)),                             # wo, bo
        const((1, C)), const((1, C)),                             # ln2 w, b
        const((C, H)), const((1, H)),                             # w1, b1
        const((H, C)), const((1, C)),                             # w2, b2
    ]

    scratch_shapes = [
        pltpu.VMEM((TQ, C), jnp.bfloat16),            # cached, pre-scaled Q
        pltpu.VMEM((n_heads, TQ, 1), jnp.float32),    # running max (per head)
        pltpu.VMEM((n_heads, TQ, 1), jnp.float32),    # running denom (per head)
        pltpu.VMEM((n_heads, TQ, hs), jnp.float32),   # running numerator
    ]

    out = pl.pallas_call(
        functools.partial(_block_kernel, n_heads),
        out_shape=jax.ShapeDtypeStruct((B, T, C), jnp.float32),
        grid=grid,
        in_specs=in_specs,
        out_specs=pl.BlockSpec((1, TQ, C), lambda b, qi, ki: (b, qi, 0)),
        scratch_shapes=scratch_shapes,
        compiler_params=pltpu.CompilerParams(
            dimension_semantics=("parallel", "parallel", "arbitrary"),
            vmem_limit_bytes=64 * 1024 * 1024,
        ),
    )(x, x,
      params["ln1_w"], params["ln1_b"],
      wq, wkv,
      wo, params["bo"],
      params["ln2_w"], params["ln2_b"],
      w1, params["b1"],
      w2, params["b2"])
    return out


def block_forward_ref(x, params, n_heads):
    """Pure-JAX f32 reference (same math as the PyTorch module)."""
    B, T, C = x.shape
    hs = C // n_heads

    def ln(h, w, b):
        mu = jnp.mean(h, axis=-1, keepdims=True)
        var = jnp.mean((h - mu) ** 2, axis=-1, keepdims=True)
        return (h - mu) * lax.rsqrt(var + LN_EPS) * w[0] + b[0]

    h1 = ln(x, params["ln1_w"], params["ln1_b"])
    q = h1 @ params["wq"]
    k = h1 @ params["wk"]
    v = h1 @ params["wv"]
    q = q.reshape(B, T, n_heads, hs).transpose(0, 2, 1, 3)
    k = k.reshape(B, T, n_heads, hs).transpose(0, 2, 1, 3)
    v = v.reshape(B, T, n_heads, hs).transpose(0, 2, 1, 3)
    s = jnp.einsum("bhqd,bhkd->bhqk", q, k) / math.sqrt(hs)
    mask = jnp.tril(jnp.ones((T, T), bool))
    s = jnp.where(mask, s, -jnp.inf)
    p = jax.nn.softmax(s, axis=-1)
    o = jnp.einsum("bhqk,bhkd->bhqd", p, v).transpose(0, 2, 1, 3).reshape(B, T, C)
    x2 = x + (o @ params["wo"] + params["bo"][0])
    h2 = ln(x2, params["ln2_w"], params["ln2_b"])
    m = jax.nn.gelu(h2 @ params["w1"] + params["b1"][0], approximate=False)
    y = m @ params["w2"] + params["b2"][0]
    return x2 + y


def init_params(key, n_embed):
    C, H = n_embed, 4 * n_embed
    ks = jax.random.split(key, 8)
    n = lambda k, shape, s: (jax.random.normal(k, shape, jnp.float32) * s)
    return {
        "ln1_w": jnp.ones((1, C), jnp.float32),
        "ln1_b": jnp.zeros((1, C), jnp.float32),
        "wq": n(ks[0], (C, C), 0.05),
        "wk": n(ks[1], (C, C), 0.05),
        "wv": n(ks[2], (C, C), 0.05),
        "wo": n(ks[3], (C, C), 0.05),
        "bo": n(ks[4], (1, C), 0.02),
        "ln2_w": jnp.ones((1, C), jnp.float32),
        "ln2_b": jnp.zeros((1, C), jnp.float32),
        "w1": n(ks[5], (C, H), 0.05),
        "b1": n(ks[6], (1, H), 0.02),
        "w2": n(ks[7], (H, C), 0.05),
        "b2": jnp.zeros((1, C), jnp.float32),
    }


if __name__ == "__main__":
    # small config: batch=2, seq=8, n_embed=32, n_heads=4 (head_size=8)
    B, T, C, NH = 2, 8, 32, 4
    key = jax.random.PRNGKey(0)
    kx, kp = jax.random.split(key)
    x = jax.random.normal(kx, (B, T, C), jnp.float32)
    params = init_params(kp, C)

    out = jax.block_until_ready(block_forward(x, params, NH))
    ref = block_forward_ref(x, params, NH)

    assert out.shape == (B, T, C)
    # bf16 MXU inputs + approx reciprocal => loosened tolerance vs f32 reference
    max_err = float(jnp.max(jnp.abs(out - ref)))
    assert max_err < 5e-2, max_err

    print("KERNEL_OK")
</pallas_src>

<mosaic_0001>
module attributes {stable_mosaic.version = 11 : i64} {
  func.func @_block_kernel(%arg0: i32, %arg1: i32, %arg2: i32, %arg3: memref<1x8x32xf32, #tpu.memory_space<vmem>>, %arg4: memref<1x8x32xf32, #tpu.memory_space<vmem>>, %arg5: memref<1x32xf32, #tpu.memory_space<vmem>>, %arg6: memref<1x32xf32, #tpu.memory_space<vmem>>, %arg7: memref<32x32xbf16, #tpu.memory_space<vmem>>, %arg8: memref<32x64xbf16, #tpu.memory_space<vmem>>, %arg9: memref<32x32xbf16, #tpu.memory_space<vmem>>, %arg10: memref<1x32xf32, #tpu.memory_space<vmem>>, %arg11: memref<1x32xf32, #tpu.memory_space<vmem>>, %arg12: memref<1x32xf32, #tpu.memory_space<vmem>>, %arg13: memref<32x128xbf16, #tpu.memory_space<vmem>>, %arg14: memref<1x128xf32, #tpu.memory_space<vmem>>, %arg15: memref<128x32xbf16, #tpu.memory_space<vmem>>, %arg16: memref<1x32xf32, #tpu.memory_space<vmem>>, %arg17: memref<1x8x32xf32, #tpu.memory_space<vmem>>, %arg18: memref<8x32xbf16, #tpu.memory_space<vmem>>, %arg19: memref<4x8x1xf32, #tpu.memory_space<vmem>>, %arg20: memref<4x8x1xf32, #tpu.memory_space<vmem>>, %arg21: memref<4x8x8xf32, #tpu.memory_space<vmem>>) attributes {dimension_semantics = [#tpu.dimension_semantics<parallel>, #tpu.dimension_semantics<parallel>, #tpu.dimension_semantics<arbitrary>], iteration_bounds = array<i64: 2, 1, 1>, scalar_prefetch = 0 : i64, scratch_operands = 4 : i64, tpu.core_type = #tpu.core_type<tc>, window_params = [{transform_indices = @transform_0, window_bounds = array<i64: 1, 8, 32>}, {transform_indices = @transform_1, window_bounds = array<i64: 1, 8, 32>}, {pipeline_mode = #tpu.pipeline_mode<synchronous>, transform_indices = @transform_2, window_bounds = array<i64: 1, 32>}, {pipeline_mode = #tpu.pipeline_mode<synchronous>, transform_indices = @transform_3, window_bounds = array<i64: 1, 32>}, {pipeline_mode = #tpu.pipeline_mode<synchronous>, transform_indices = @transform_4, window_bounds = array<i64: 32, 32>}, {pipeline_mode = #tpu.pipeline_mode<synchronous>, transform_indices = @transform_5, window_bounds = array<i64: 32, 64>}, {pipeline_mode = #tpu.pipeline_mode<synchronous>, transform_indices = @transform_6, window_bounds = array<i64: 32, 32>}, {pipeline_mode = #tpu.pipeline_mode<synchronous>, transform_indices = @transform_7, window_bounds = array<i64: 1, 32>}, {pipeline_mode = #tpu.pipeline_mode<synchronous>, transform_indices = @transform_8, window_bounds = array<i64: 1, 32>}, {pipeline_mode = #tpu.pipeline_mode<synchronous>, transform_indices = @transform_9, window_bounds = array<i64: 1, 32>}, {pipeline_mode = #tpu.pipeline_mode<synchronous>, transform_indices = @transform_10, window_bounds = array<i64: 32, 128>}, {pipeline_mode = #tpu.pipeline_mode<synchronous>, transform_indices = @transform_11, window_bounds = array<i64: 1, 128>}, {pipeline_mode = #tpu.pipeline_mode<synchronous>, transform_indices = @transform_12, window_bounds = array<i64: 128, 32>}, {pipeline_mode = #tpu.pipeline_mode<synchronous>, transform_indices = @transform_13, window_bounds = array<i64: 1, 32>}, {transform_indices = @transform_14, window_bounds = array<i64: 1, 8, 32>}]} {
    %c0_i32 = arith.constant 0 : i32
    %0 = arith.cmpi eq, %arg2, %c0_i32 : i32
    %1 = arith.extui %0 : i1 to i32
    %c0_i32_0 = arith.constant 0 : i32
    %2 = arith.cmpi ne, %1, %c0_i32_0 : i32
    scf.if %2 {
      %c0 = arith.constant 0 : index
      %c0_5 = arith.constant 0 : index
      %c0_6 = arith.constant 0 : index
      %12 = vector.load %arg3[%c0, %c0_5, %c0_6] : memref<1x8x32xf32, #tpu.memory_space<vmem>>, vector<1x8x32xf32>
      %13 = vector.shape_cast %12 : vector<1x8x32xf32> to vector<8x32xf32>
      %c0_7 = arith.constant 0 : index
      %c0_8 = arith.constant 0 : index
      %14 = vector.load %arg5[%c0_7, %c0_8] : memref<1x32xf32, #tpu.memory_space<vmem>>, vector<1x32xf32>
      %15 = vector.shape_cast %14 : vector<1x32xf32> to vector<32xf32>
      %c0_9 = arith.constant 0 : index
      %c0_10 = arith.constant 0 : index
      %16 = vector.load %arg6[%c0_9, %c0_10] : memref<1x32xf32, #tpu.memory_space<vmem>>, vector<1x32xf32>
      %17 = vector.shape_cast %16 : vector<1x32xf32> to vector<32xf32>
      %cst = arith.constant dense<0.000000e+00> : vector<8xf32>
      %18 = vector.multi_reduction <add>, %13, %cst [1] : vector<8x32xf32> to vector<8xf32>
      %19 = vector.shape_cast %18 : vector<8xf32> to vector<8x1xf32>
      %cst_11 = arith.constant 3.200000e+01 : f32
      %20 = vector.broadcast %cst_11 : f32 to vector<8x1xf32>
      %21 = arith.divf %19, %20 : vector<8x1xf32>
      %22 = vector.broadcast %21 : vector<8x1xf32> to vector<8x32xf32>
      %23 = arith.subf %13, %22 : vector<8x32xf32>
      %24 = arith.mulf %23, %23 : vector<8x32xf32>
      %cst_12 = arith.constant dense<0.000000e+00> : vector<8xf32>
      %25 = vector.multi_reduction <add>, %24, %cst_12 [1] : vector<8x32xf32> to vector<8xf32>
      %26 = vector.shape_cast %25 : vector<8xf32> to vector<8x1xf32>
      %cst_13 = arith.constant 3.200000e+01 : f32
      %27 = vector.broadcast %cst_13 : f32 to vector<8x1xf32>
      %28 = arith.divf %26, %27 : vector<8x1xf32>
      %29 = vector.broadcast %21 : vector<8x1xf32> to vector<8x32xf32>
      %30 = arith.subf %13, %29 : vector<8x32xf32>
      %cst_14 = arith.constant 9.99999974E-6 : f32
      %31 = vector.broadcast %cst_14 : f32 to vector<8x1xf32>
      %32 = arith.addf %28, %31 : vector<8x1xf32>
      %33 = math.rsqrt %32 : vector<8x1xf32>
      %34 = vector.broadcast %33 : vector<8x1xf32> to vector<8x32xf32>
      %35 = arith.mulf %30, %34 : vector<8x32xf32>
      %36 = vector.shape_cast %15 : vector<32xf32> to vector<1x32xf32>
      %37 = vector.broadcast %36 : vector<1x32xf32> to vector<8x32xf32>
      %38 = arith.mulf %35, %37 : vector<8x32xf32>
      %39 = vector.shape_cast %17 : vector<32xf32> to vector<1x32xf32>
      %40 = vector.broadcast %39 : vector<1x32xf32> to vector<8x32xf32>
      %41 = arith.addf %38, %40 : vector<8x32xf32>
      %42 = arith.truncf %41 : vector<8x32xf32> to vector<8x32xbf16>
      %c0_15 = arith.constant 0 : index
      %c0_16 = arith.constant 0 : index
      %43 = vector.load %arg7[%c0_15, %c0_16] : memref<32x32xbf16, #tpu.memory_space<vmem>>, vector<32x32xbf16>
      %cst_17 = arith.constant dense<0.000000e+00> : vector<8x32xf32>
      %44 = tpu.matmul %42, %43, %cst_17 {dimension_numbers = #tpu.dot_dimension_numbers<[1], [0], [0], [1], [0, 0, 1, 1], [], []>} : vector<8x32xbf16>, vector<32x32xbf16>, vector<8x32xf32> -> vector<8x32xf32>
      %cst_18 = arith.constant 0.353553385 : f32
      %45 = vector.broadcast %cst_18 : f32 to vector<8x32xf32>
      %46 = arith.mulf %44, %45 : vector<8x32xf32>
      %47 = arith.truncf %46 : vector<8x32xf32> to vector<8x32xbf16>
      %c0_19 = arith.constant 0 : index
      %c0_20 = arith.constant 0 : index
      %48 = vector.load %arg18[%c0_19, %c0_20] : memref<8x32xbf16, #tpu.memory_space<vmem>>, vector<8x32xbf16>
      tpu.vector_store %arg18[%c0_19, %c0_20], %47 {strides = array<i32>} : memref<8x32xbf16, #tpu.memory_space<vmem>>, vector<8x32xbf16>,
      %cst_21 = arith.constant -1.000000e+30 : f32
      %49 = vector.broadcast %cst_21 : f32 to vector<4x8x1xf32>
      %c0_22 = arith.constant 0 : index
      %c0_23 = arith.constant 0 : index
      %c0_24 = arith.constant 0 : index
      %50 = vector.load %arg19[%c0_22, %c0_23, %c0_24] : memref<4x8x1xf32, #tpu.memory_space<vmem>>, vector<4x8x1xf32>
      tpu.vector_store %arg19[%c0_22, %c0_23, %c0_24], %49 {strides = array<i32>} : memref<4x8x1xf32, #tpu.memory_space<vmem>>, vector<4x8x1xf32>,
      %cst_25 = arith.constant 0.000000e+00 : f32
      %51 = vector.broadcast %cst_25 : f32 to vector<4x8x1xf32>
      %c0_26 = arith.constant 0 : index
      %c0_27 = arith.constant 0 : index
      %c0_28 = arith.constant 0 : index
      %52 = vector.load %arg20[%c0_26, %c0_27, %c0_28] : memref<4x8x1xf32, #tpu.memory_space<vmem>>, vector<4x8x1xf32>
      tpu.vector_store %arg20[%c0_26, %c0_27, %c0_28], %51 {strides = array<i32>} : memref<4x8x1xf32, #tpu.memory_space<vmem>>, vector<4x8x1xf32>,
      %cst_29 = arith.constant 0.000000e+00 : f32
      %53 = vector.broadcast %cst_29 : f32 to vector<4x8x8xf32>
      %c0_30 = arith.constant 0 : index
      %c0_31 = arith.constant 0 : index
      %c0_32 = arith.constant 0 : index
      %54 = vector.load %arg21[%c0_30, %c0_31, %c0_32] : memref<4x8x8xf32, #tpu.memory_space<vmem>>, vector<4x8x8xf32>
      tpu.vector_store %arg21[%c0_30, %c0_31, %c0_32], %53 {strides = array<i32>} : memref<4x8x8xf32, #tpu.memory_space<vmem>>, vector<4x8x8xf32>,
    } else {
    }
    %c8_i32 = arith.constant 8 : i32
    %3 = arith.muli %arg2, %c8_i32 : i32
    %c1_i32 = arith.constant 1 : i32
    %4 = arith.addi %arg1, %c1_i32 : i32
    %c8_i32_1 = arith.constant 8 : i32
    %5 = arith.muli %4, %c8_i32_1 : i32
    %6 = arith.cmpi slt, %3, %5 : i32
    %7 = arith.extui %6 : i1 to i32
    %c0_i32_2 = arith.constant 0 : i32
    %8 = arith.cmpi ne, %7, %c0_i32_2 : i32
    scf.if %8 {
      %c0 = arith.constant 0 : index
      %c0_5 = arith.constant 0 : index
      %c0_6 = arith.constant 0 : index
      %12 = vector.load %arg4[%c0, %c0_5, %c0_6] : memref<1x8x32xf32, #tpu.memory_space<vmem>>, vector<1x8x32xf32>
      %13 = vector.shape_cast %12 : vector<1x8x32xf32> to vector<8x32xf32>
      %c0_7 = arith.constant 0 : index
      %c0_8 = arith.constant 0 : index
      %14 = vector.load %arg5[%c0_7, %c0_8] : memref<1x32xf32, #tpu.memory_space<vmem>>, vector<1x32xf32>
      %15 = vector.shape_cast %14 : vector<1x32xf32> to vector<32xf32>
      %c0_9 = arith.constant 0 : index
      %c0_10 = arith.constant 0 : index
      %16 = vector.load %arg6[%c0_9, %c0_10] : memref<1x32xf32, #tpu.memory_space<vmem>>, vector<1x32xf32>
      %17 = vector.shape_cast %16 : vector<1x32xf32> to vector<32xf32>
      %cst = arith.constant dense<0.000000e+00> : vector<8xf32>
      %18 = vector.multi_reduction <add>, %13, %cst [1] : vector<8x32xf32> to vector<8xf32>
      %19 = vector.shape_cast %18 : vector<8xf32> to vector<8x1xf32>
      %cst_11 = arith.constant 3.200000e+01 : f32
      %20 = vector.broadcast %cst_11 : f32 to vector<8x1xf32>
      %21 = arith.divf %19, %20 : vector<8x1xf32>
      %22 = vector.broadcast %21 : vector<8x1xf32> to vector<8x32xf32>
      %23 = arith.subf %13, %22 : vector<8x32xf32>
      %24 = arith.mulf %23, %23 : vector<8x32xf32>
      %cst_12 = arith.constant dense<0.000000e+00> : vector<8xf32>
      %25 = vector.multi_reduction <add>, %24, %cst_12 [1] : vector<8x32xf32> to vector<8xf32>
      %26 = vector.shape_cast %25 : vector<8xf32> to vector<8x1xf32>
      %cst_13 = arith.constant 3.200000e+01 : f32
      %27 = vector.broadcast %cst_13 : f32 to vector<8x1xf32>
      %28 = arith.divf %26, %27 : vector<8x1xf32>
      %29 = vector.broadcast %21 : vector<8x1xf32> to vector<8x32xf32>
      %30 = arith.subf %13, %29 : vector<8x32xf32>
      %cst_14 = arith.constant 9.99999974E-6 : f32
      %31 = vector.broadcast %cst_14 : f32 to vector<8x1xf32>
      %32 = arith.addf %28, %31 : vector<8x1xf32>
      %33 = math.rsqrt %32 : vector<8x1xf32>
      %34 = vector.broadcast %33 : vector<8x1xf32> to vector<8x32xf32>
      %35 = arith.mulf %30, %34 : vector<8x32xf32>
      %36 = vector.shape_cast %15 : vector<32xf32> to vector<1x32xf32>
      %37 = vector.broadcast %36 : vector<1x32xf32> to vector<8x32xf32>
      %38 = arith.mulf %35, %37 : vector<8x32xf32>
      %39 = vector.shape_cast %17 : vector<32xf32> to vector<1x32xf32>
      %40 = vector.broadcast %39 : vector<1x32xf32> to vector<8x32xf32>
      %41 = arith.addf %38, %40 : vector<8x32xf32>
      %42 = arith.truncf %41 : vector<8x32xf32> to vector<8x32xbf16>
      %c0_15 = arith.constant 0 : index
      %c0_16 = arith.constant 0 : index
      %43 = vector.load %arg8[%c0_15, %c0_16] : memref<32x64xbf16, #tpu.memory_space<vmem>>, vector<32x64xbf16>
      %cst_17 = arith.constant dense<0.000000e+00> : vector<8x64xf32>
      %44 = tpu.matmul %42, %43, %cst_17 {dimension_numbers = #tpu.dot_dimension_numbers<[1], [0], [0], [1], [0, 0, 1, 1], [], []>} : vector<8x32xbf16>, vector<32x64xbf16>, vector<8x64xf32> -> vector<8x64xf32>
      %45 = arith.truncf %44 : vector<8x64xf32> to vector<8x64xbf16>
      %c8_i32_18 = arith.constant 8 : i32
      %46 = arith.muli %arg1, %c8_i32_18 : i32
      %47 = tpu.iota {dimensions = array<i32: 0>} : vector<8x8xi32>
      %48 = vector.broadcast %46 : i32 to vector<8x8xi32>
      %49 = arith.addi %48, %47 : vector<8x8xi32>
      %c8_i32_19 = arith.constant 8 : i32
      %50 = arith.muli %arg2, %c8_i32_19 : i32
      %51 = tpu.iota {dimensions = array<i32: 1>} : vector<8x8xi32>
      %52 = vector.broadcast %50 : i32 to vector<8x8xi32>
      %53 = arith.addi %52, %51 : vector<8x8xi32>
      %54 = arith.cmpi sle, %53, %49 : vector<8x8xi32>
      %c0_20 = arith.constant 0 : index
      %c0_21 = arith.constant 0 : index
      %55 = vector.load %arg18[%c0_20, %c0_21] : memref<8x32xbf16, #tpu.memory_space<vmem>>, vector<8x32xbf16>
      %56 = vector.extract_strided_slice %55 {offsets = [0, 0], sizes = [8, 8], strides = [1, 1]} : vector<8x32xbf16> to vector<8x8xbf16>
      %57 = vector.extract_strided_slice %45 {offsets = [0, 0], sizes = [8, 8], strides = [1, 1]} : vector<8x64xbf16> to vector<8x8xbf16>
      %58 = vector.extract_strided_slice %45 {offsets = [0, 32], sizes = [8, 8], strides = [1, 1]} : vector<8x64xbf16> to vector<8x8xbf16>
      %cst_22 = arith.constant dense<0.000000e+00> : vector<8x8xf32>
      %59 = tpu.matmul %56, %57, %cst_22 {dimension_numbers = #tpu.dot_dimension_numbers<[1], [1], [0], [0], [0, 0, 1, 0], [], []>} : vector<8x8xbf16>, vector<8x8xbf16>, vector<8x8xf32> -> vector<8x8xf32>
      %cst_23 = arith.constant -1.000000e+30 : f32
      %60 = vector.broadcast %cst_23 : f32 to vector<8x8xf32>
      %61 = arith.select %54, %59, %60 : vector<8x8xi1>, vector<8x8xf32>
      %c0_24 = arith.constant 0 : index
      %c0_25 = arith.constant 0 : index
      %c0_26 = arith.constant 0 : index
      %62 = vector.load %arg19[%c0_24, %c0_25, %c0_26] : memref<4x8x1xf32, #tpu.memory_space<vmem>>, vector<1x8x1xf32>
      %63 = vector.shape_cast %62 : vector<1x8x1xf32> to vector<8x1xf32>
      %cst_27 = arith.constant dense<0xFF800000> : vector<8xf32>
      %64 = vector.multi_reduction <maximumf>, %61, %cst_27 [1] : vector<8x8xf32> to vector<8xf32>
      %65 = vector.shape_cast %64 : vector<8xf32> to vector<8x1xf32>
      %66 = arith.maximumf %63, %65 : vector<8x1xf32>
      %67 = arith.subf %63, %66 : vector<8x1xf32>
      %68 = math.exp %67 : vector<8x1xf32>
      %69 = vector.broadcast %66 : vector<8x1xf32> to vector<8x8xf32>
      %70 = arith.subf %61, %69 : vector<8x8xf32>
      %71 = math.exp %70 : vector<8x8xf32>
      %c0_28 = arith.constant 0 : index
      %c0_29 = arith.constant 0 : index
      %c0_30 = arith.constant 0 : index
      %72 = vector.load %arg20[%c0_28, %c0_29, %c0_30] : memref<4x8x1xf32, #tpu.memory_space<vmem>>, vector<1x8x1xf32>
      %73 = vector.shape_cast %72 : vector<1x8x1xf32> to vector<8x1xf32>
      %74 = arith.mulf %68, %73 : vector<8x1xf32>
      %cst_31 = arith.constant dense<0.000000e+00> : vector<8xf32>
      %75 = vector.multi_reduction <add>, %71, %cst_31 [1] : vector<8x8xf32> to vector<8xf32>
      %76 = vector.shape_cast %75 : vector<8xf32> to vector<8x1xf32>
      %77 = arith.addf %74, %76 : vector<8x1xf32>
      %c0_32 = arith.constant 0 : index
      %c0_33 = arith.constant 0 : index
      %c0_34 = arith.constant 0 : index
      %78 = vector.load %arg20[%c0_32, %c0_33, %c0_34] : memref<4x8x1xf32, #tpu.memory_space<vmem>>, vector<1x8x1xf32>
      %79 = vector.shape_cast %78 : vector<1x8x1xf32> to vector<8x1xf32>
      %80 = vector.shape_cast %77 : vector<8x1xf32> to vector<1x8x1xf32>
      tpu.vector_store %arg20[%c0_32, %c0_33, %c0_34], %80 {strides = array<i32>} : memref<4x8x1xf32, #tpu.memory_space<vmem>>, vector<1x8x1xf32>,
      %c0_35 = arith.constant 0 : index
      %c0_36 = arith.constant 0 : index
      %c0_37 = arith.constant 0 : index
      %81 = vector.load %arg21[%c0_35, %c0_36, %c0_37] : memref<4x8x8xf32, #tpu.memory_space<vmem>>, vector<1x8x8xf32>
      %82 = vector.shape_cast %81 : vector<1x8x8xf32> to vector<8x8xf32>
      %83 = vector.broadcast %68 : vector<8x1xf32> to vector<8x8xf32>
      %84 = arith.mulf %83, %82 : vector<8x8xf32>
      %85 = arith.truncf %71 : vector<8x8xf32> to vector<8x8xbf16>
      %cst_38 = arith.constant dense<0.000000e+00> : vector<8x8xf32>
      %86 = tpu.matmul %85, %58, %cst_38 {dimension_numbers = #tpu.dot_dimension_numbers<[1], [0], [0], [1], [0, 0, 1, 1], [], []>} : vector<8x8xbf16>, vector<8x8xbf16>, vector<8x8xf32> -> vector<8x8xf32>
      %87 = arith.addf %84, %86 : vector<8x8xf32>
      %c0_39 = arith.constant 0 : index
      %c0_40 = arith.constant 0 : index
      %c0_41 = arith.constant 0 : index
      %88 = vector.load %arg21[%c0_39, %c0_40, %c0_41] : memref<4x8x8xf32, #tpu.memory_space<vmem>>, vector<1x8x8xf32>
      %89 = vector.shape_cast %88 : vector<1x8x8xf32> to vector<8x8xf32>
      %90 = vector.shape_cast %87 : vector<8x8xf32> to vector<1x8x8xf32>
      tpu.vector_store %arg21[%c0_39, %c0_40, %c0_41], %90 {strides = array<i32>} : memref<4x8x8xf32, #tpu.memory_space<vmem>>, vector<1x8x8xf32>,
      %c0_42 = arith.constant 0 : index
      %c0_43 = arith.constant 0 : index
      %c0_44 = arith.constant 0 : index
      %91 = vector.load %arg19[%c0_42, %c0_43, %c0_44] : memref<4x8x1xf32, #tpu.memory_space<vmem>>, vector<1x8x1xf32>
      %92 = vector.shape_cast %91 : vector<1x8x1xf32> to vector<8x1xf32>
      %93 = vector.shape_cast %66 : vector<8x1xf32> to vector<1x8x1xf32>
      tpu.vector_store %arg19[%c0_42, %c0_43, %c0_44], %93 {strides = array<i32>} : memref<4x8x1xf32, #tpu.memory_space<vmem>>, vector<1x8x1xf32>,
      %94 = vector.extract_strided_slice %55 {offsets = [0, 8], sizes = [8, 8], strides = [1, 1]} : vector<8x32xbf16> to vector<8x8xbf16>
      %95 = vector.extract_strided_slice %45 {offsets = [0, 8], sizes = [8, 8], strides = [1, 1]} : vector<8x64xbf16> to vector<8x8xbf16>
      %96 = vector.extract_strided_slice %45 {offsets = [0, 40], sizes = [8, 8], strides = [1, 1]} : vector<8x64xbf16> to vector<8x8xbf16>
      %cst_45 = arith.constant dense<0.000000e+00> : vector<8x8xf32>
      %97 = tpu.matmul %94, %95, %cst_45 {dimension_numbers = #tpu.dot_dimension_numbers<[1], [1], [0], [0], [0, 0, 1, 0], [], []>} : vector<8x8xbf16>, vector<8x8xbf16>, vector<8x8xf32> -> vector<8x8xf32>
      %cst_46 = arith.constant -1.000000e+30 : f32
      %98 = vector.broadcast %cst_46 : f32 to vector<8x8xf32>
      %99 = arith.select %54, %97, %98 : vector<8x8xi1>, vector<8x8xf32>
      %c1 = arith.constant 1 : index
      %c0_47 = arith.constant 0 : index
      %c0_48 = arith.constant 0 : index
      %100 = vector.load %arg19[%c1, %c0_47, %c0_48] : memref<4x8x1xf32, #tpu.memory_space<vmem>>, vector<1x8x1xf32>
      %101 = vector.shape_cast %100 : vector<1x8x1xf32> to vector<8x1xf32>
      %cst_49 = arith.constant dense<0xFF800000> : vector<8xf32>
      %102 = vector.multi_reduction <maximumf>, %99, %cst_49 [1] : vector<8x8xf32> to vector<8xf32>
      %103 = vector.shape_cast %102 : vector<8xf32> to vector<8x1xf32>
      %104 = arith.maximumf %101, %103 : vector<8x1xf32>
      %105 = arith.subf %101, %104 : vector<8x1xf32>
      %106 = math.exp %105 : vector<8x1xf32>
      %107 = vector.broadcast %104 : vector<8x1xf32> to vector<8x8xf32>
      %108 = arith.subf %99, %107 : vector<8x8xf32>
      %109 = math.exp %108 : vector<8x8xf32>
      %c1_50 = arith.constant 1 : index
      %c0_51 = arith.constant 0 : index
      %c0_52 = arith.constant 0 : index
      %110 = vector.load %arg20[%c1_50, %c0_51, %c0_52] : memref<4x8x1xf32, #tpu.memory_space<vmem>>, vector<1x8x1xf32>
      %111 = vector.shape_cast %110 : vector<1x8x1xf32> to vector<8x1xf32>
      %112 = arith.mulf %106, %111 : vector<8x1xf32>
      %cst_53 = arith.constant dense<0.000000e+00> : vector<8xf32>
      %113 = vector.multi_reduction <add>, %109, %cst_53 [1] : vector<8x8xf32> to vector<8xf32>
      %114 = vector.shape_cast %113 : vector<8xf32> to vector<8x1xf32>
      %115 = arith.addf %112, %114 : vector<8x1xf32>
      %c1_54 = arith.constant 1 : index
      %c0_55 = arith.constant 0 : index
      %c0_56 = arith.constant 0 : index
      %116 = vector.load %arg20[%c1_54, %c0_55, %c0_56] : memref<4x8x1xf32, #tpu.memory_space<vmem>>, vector<1x8x1xf32>
      %117 = vector.shape_cast %116 : vector<1x8x1xf32> to vector<8x1xf32>
      %118 = vector.shape_cast %115 : vector<8x1xf32> to vector<1x8x1xf32>
      tpu.vector_store %arg20[%c1_54, %c0_55, %c0_56], %118 {strides = array<i32>} : memref<4x8x1xf32, #tpu.memory_space<vmem>>, vector<1x8x1xf32>,
      %c1_57 = arith.constant 1 : index
      %c0_58 = arith.constant 0 : index
      %c0_59 = arith.constant 0 : index
      %119 = vector.load %arg21[%c1_57, %c0_58, %c0_59] : memref<4x8x8xf32, #tpu.memory_space<vmem>>, vector<1x8x8xf32>
      %120 = vector.shape_cast %119 : vector<1x8x8xf32> to vector<8x8xf32>
      %121 = vector.broadcast %106 : vector<8x1xf32> to vector<8x8xf32>
      %122 = arith.mulf %121, %120 : vector<8x8xf32>
      %123 = arith.truncf %109 : vector<8x8xf32> to vector<8x8xbf16>
      %cst_60 = arith.constant dense<0.000000e+00> : vector<8x8xf32>
      %124 = tpu.matmul %123, %96, %cst_60 {dimension_numbers = #tpu.dot_dimension_numbers<[1], [0], [0], [1], [0, 0, 1, 1], [], []>} : vector<8x8xbf16>, vector<8x8xbf16>, vector<8x8xf32> -> vector<8x8xf32>
      %125 = arith.addf %122, %124 : vector<8x8xf32>
      %c1_61 = arith.constant 1 : index
      %c0_62 = arith.constant 0 : index
      %c0_63 = arith.constant 0 : index
      %126 = vector.load %arg21[%c1_61, %c0_62, %c0_63] : memref<4x8x8xf32, #tpu.memory_space<vmem>>, vector<1x8x8xf32>
      %127 = vector.shape_cast %126 : vector<1x8x8xf32> to vector<8x8xf32>
      %128 = vector.shape_cast %125 : vector<8x8xf32> to vector<1x8x8xf32>
      tpu.vector_store %arg21[%c1_61, %c0_62, %c0_63], %128 {strides = array<i32>} : memref<4x8x8xf32, #tpu.memory_space<vmem>>, vector<1x8x8xf32>,
      %c1_64 = arith.constant 1 : index
      %c0_65 = arith.constant 0 : index
      %c0_66 = arith.constant 0 : index
      %129 = vector.load %arg19[%c1_64, %c0_65, %c0_66] : memref<4x8x1xf32, #tpu.memory_space<vmem>>, vector<1x8x1xf32>
      %130 = vector.shape_cast %129 : vector<1x8x1xf32> to vector<8x1xf32>
      %131 = vector.shape_cast %104 : vector<8x1xf32> to vector<1x8x1xf32>
      tpu.vector_store %arg19[%c1_64, %c0_65, %c0_66], %131 {strides = array<i32>} : memref<4x8x1xf32, #tpu.memory_space<vmem>>, vector<1x8x1xf32>,
      %132 = vector.extract_strided_slice %55 {offsets = [0, 16], sizes = [8, 8], strides = [1, 1]} : vector<8x32xbf16> to vector<8x8xbf16>
      %133 = vector.extract_strided_slice %45 {offsets = [0, 16], sizes = [8, 8], strides = [1, 1]} : vector<8x64xbf16> to vector<8x8xbf16>
      %134 = vector.extract_strided_slice %45 {offsets = [0, 48], sizes = [8, 8], strides = [1, 1]} : vector<8x64xbf16> to vector<8x8xbf16>
      %cst_67 = arith.constant dense<0.000000e+00> : vector<8x8xf32>
      %135 = tpu.matmul %132, %133, %cst_67 {dimension_numbers = #tpu.dot_dimension_numbers<[1], [1], [0], [0], [0, 0, 1, 0], [], []>} : vector<8x8xbf16>, vector<8x8xbf16>, vector<8x8xf32> -> vector<8x8xf32>
      %cst_68 = arith.constant -1.000000e+30 : f32
      %136 = vector.broadcast %cst_68 : f32 to vector<8x8xf32>
      %137 = arith.select %54, %135, %136 : vector<8x8xi1>, vector<8x8xf32>
      %c2 = arith.constant 2 : index
      %c0_69 = arith.constant 0 : index
      %c0_70 = arith.constant 0 : index
      %138 = vector.load %arg19[%c2, %c0_69, %c0_70] : memref<4x8x1xf32, #tpu.memory_space<vmem>>, vector<1x8x1xf32>
      %139 = vector.shape_cast %138 : vector<1x8x1xf32> to vector<8x1xf32>
      %cst_71 = arith.constant dense<0xFF800000> : vector<8xf32>
      %140 = vector.multi_reduction <maximumf>, %137, %cst_71 [1] : vector<8x8xf32> to vector<8xf32>
      %141 = vector.shape_cast %140 : vector<8xf32> to vector<8x1xf32>
      %142 = arith.maximumf %139, %141 : vector<8x1xf32>
      %143 = arith.subf %139, %142 : vector<8x1xf32>
      %144 = math.exp %143 : vector<8x1xf32>
      %145 = vector.broadcast %142 : vector<8x1xf32> to vector<8x8xf32>
      %146 = arith.subf %137, %145 : vector<8x8xf32>
      %147 = math.exp %146 : vector<8x8xf32>
      %c2_72 = arith.constant 2 : index
      %c0_73 = arith.constant 0 : index
      %c0_74 = arith.constant 0 : index
      %148 = vector.load %arg20[%c2_72, %c0_73, %c0_74] : memref<4x8x1xf32, #tpu.memory_space<vmem>>, vector<1x8x1xf32>
      %149 = vector.shape_cast %148 : vector<1x8x1xf32> to vector<8x1xf32>
      %150 = arith.mulf %144, %149 : vector<8x1xf32>
      %cst_75 = arith.constant dense<0.000000e+00> : vector<8xf32>
      %151 = vector.multi_reduction <add>, %147, %cst_75 [1] : vector<8x8xf32> to vector<8xf32>
      %152 = vector.shape_cast %151 : vector<8xf32> to vector<8x1xf32>
      %153 = arith.addf %150, %152 : vector<8x1xf32>
      %c2_76 = arith.constant 2 : index
      %c0_77 = arith.constant 0 : index
      %c0_78 = arith.constant 0 : index
      %154 = vector.load %arg20[%c2_76, %c0_77, %c0_78] : memref<4x8x1xf32, #tpu.memory_space<vmem>>, vector<1x8x1xf32>
      %155 = vector.shape_cast %154 : vector<1x8x1xf32> to vector<8x1xf32>
      %156 = vector.shape_cast %153 : vector<8x1xf32> to vector<1x8x1xf32>
      tpu.vector_store %arg20[%c2_76, %c0_77, %c0_78], %156 {strides = array<i32>} : memref<4x8x1xf32, #tpu.memory_space<vmem>>, vector<1x8x1xf32>,
      %c2_79 = arith.constant 2 : index
      %c0_80 = arith.constant 0 : index
      %c0_81 = arith.constant 0 : index
      %157 = vector.load %arg21[%c2_79, %c0_80, %c0_81] : memref<4x8x8xf32, #tpu.memory_space<vmem>>, vector<1x8x8xf32>
      %158 = vector.shape_cast %157 : vector<1x8x8xf32> to vector<8x8xf32>
      %159 = vector.broadcast %144 : vector<8x1xf32> to vector<8x8xf32>
      %160 = arith.mulf %159, %158 : vector<8x8xf32>
      %161 = arith.truncf %147 : vector<8x8xf32> to vector<8x8xbf16>
      %cst_82 = arith.constant dense<0.000000e+00> : vector<8x8xf32>
      %162 = tpu.matmul %161, %134, %cst_82 {dimension_numbers = #tpu.dot_dimension_numbers<[1], [0], [0], [1], [0, 0, 1, 1], [], []>} : vector<8x8xbf16>, vector<8x8xbf16>, vector<8x8xf32> -> vector<8x8xf32>
      %163 = arith.addf %160, %162 : vector<8x8xf32>
      %c2_83 = arith.constant 2 : index
      %c0_84 = arith.constant 0 : index
      %c0_85 = arith.constant 0 : index
      %164 = vector.load %arg21[%c2_83, %c0_84, %c0_85] : memref<4x8x8xf32, #tpu.memory_space<vmem>>, vector<1x8x8xf32>
      %165 = vector.shape_cast %164 : vector<1x8x8xf32> to vector<8x8xf32>
      %166 = vector.shape_cast %163 : vector<8x8xf32> to vector<1x8x8xf32>
      tpu.vector_store %arg21[%c2_83, %c0_84, %c0_85], %166 {strides = array<i32>} : memref<4x8x8xf32, #tpu.memory_space<vmem>>, vector<1x8x8xf32>,
      %c2_86 = arith.constant 2 : index
      %c0_87 = arith.constant 0 : index
      %c0_88 = arith.constant 0 : index
      %167 = vector.load %arg19[%c2_86, %c0_87, %c0_88] : memref<4x8x1xf32, #tpu.memory_space<vmem>>, vector<1x8x1xf32>
      %168 = vector.shape_cast %167 : vector<1x8x1xf32> to vector<8x1xf32>
      %169 = vector.shape_cast %142 : vector<8x1xf32> to vector<1x8x1xf32>
      tpu.vector_store %arg19[%c2_86, %c0_87, %c0_88], %169 {strides = array<i32>} : memref<4x8x1xf32, #tpu.memory_space<vmem>>, vector<1x8x1xf32>,
      %170 = vector.extract_strided_slice %55 {offsets = [0, 24], sizes = [8, 8], strides = [1, 1]} : vector<8x32xbf16> to vector<8x8xbf16>
      %171 = vector.extract_strided_slice %45 {offsets = [0, 24], sizes = [8, 8], strides = [1, 1]} : vector<8x64xbf16> to vector<8x8xbf16>
      %172 = vector.extract_strided_slice %45 {offsets = [0, 56], sizes = [8, 8], strides = [1, 1]} : vector<8x64xbf16> to vector<8x8xbf16>
      %cst_89 = arith.constant dense<0.000000e+00> : vector<8x8xf32>
      %173 = tpu.matmul %170, %171, %cst_89 {dimension_numbers = #tpu.dot_dimension_numbers<[1], [1], [0], [0], [0, 0, 1, 0], [], []>} : vector<8x8xbf16>, vector<8x8xbf16>, vector<8x8xf32> -> vector<8x8xf32>
      %cst_90 = arith.constant -1.000000e+30 : f32
      %174 = vector.broadcast %cst_90 : f32 to vector<8x8xf32>
      %175 = arith.select %54, %173, %174 : vector<8x8xi1>, vector<8x8xf32>
      %c3 = arith.constant 3 : index
      %c0_91 = arith.constant 0 : index
      %c0_92 = arith.constant 0 : index
      %176 = vector.load %arg19[%c3, %c0_91, %c0_92] : memref<4x8x1xf32, #tpu.memory_space<vmem>>, vector<1x8x1xf32>
      %177 = vector.shape_cast %176 : vector<1x8x1xf32> to vector<8x1xf32>
      %cst_93 = arith.constant dense<0xFF800000> : vector<8xf32>
      %178 = vector.multi_reduction <maximumf>, %175, %cst_93 [1] : vector<8x8xf32> to vector<8xf32>
      %179 = vector.shape_cast %178 : vector<8xf32> to vector<8x1xf32>
      %180 = arith.maximumf %177, %179 : vector<8x1xf32>
      %181 = arith.subf %177, %180 : vector<8x1xf32>
      %182 = math.exp %181 : vector<8x1xf32>
      %183 = vector.broadcast %180 : vector<8x1xf32> to vector<8x8xf32>
      %184 = arith.subf %175, %183 : vector<8x8xf32>
      %185 = math.exp %184 : vector<8x8xf32>
      %c3_94 = arith.constant 3 : index
      %c0_95 = arith.constant 0 : index
      %c0_96 = arith.constant 0 : index
      %186 = vector.load %arg20[%c3_94, %c0_95, %c0_96] : memref<4x8x1xf32, #tpu.memory_space<vmem>>, vector<1x8x1xf32>
      %187 = vector.shape_cast %186 : vector<1x8x1xf32> to vector<8x1xf32>
      %188 = arith.mulf %182, %187 : vector<8x1xf32>
      %cst_97 = arith.constant dense<0.000000e+00> : vector<8xf32>
      %189 = vector.multi_reduction <add>, %185, %cst_97 [1] : vector<8x8xf32> to vector<8xf32>
      %190 = vector.shape_cast %189 : vector<8xf32> to vector<8x1xf32>
      %191 = arith.addf %188, %190 : vector<8x1xf32>
      %c3_98 = arith.constant 3 : index
      %c0_99 = arith.constant 0 : index
      %c0_100 = arith.constant 0 : index
      %192 = vector.load %arg20[%c3_98, %c0_99, %c0_100] : memref<4x8x1xf32, #tpu.memory_space<vmem>>, vector<1x8x1xf32>
      %193 = vector.shape_cast %192 : vector<1x8x1xf32> to vector<8x1xf32>
      %194 = vector.shape_cast %191 : vector<8x1xf32> to vector<1x8x1xf32>
      tpu.vector_store %arg20[%c3_98, %c0_99, %c0_100], %194 {strides = array<i32>} : memref<4x8x1xf32, #tpu.memory_space<vmem>>, vector<1x8x1xf32>,
      %c3_101 = arith.constant 3 : index
      %c0_102 = arith.constant 0 : index
      %c0_103 = arith.constant 0 : index
      %195 = vector.load %arg21[%c3_101, %c0_102, %c0_103] : memref<4x8x8xf32, #tpu.memory_space<vmem>>, vector<1x8x8xf32>
      %196 = vector.shape_cast %195 : vector<1x8x8xf32> to vector<8x8xf32>
      %197 = vector.broadcast %182 : vector<8x1xf32> to vector<8x8xf32>
      %198 = arith.mulf %197, %196 : vector<8x8xf32>
      %199 = arith.truncf %185 : vector<8x8xf32> to vector<8x8xbf16>
      %cst_104 = arith.constant dense<0.000000e+00> : vector<8x8xf32>
      %200 = tpu.matmul %199, %172, %cst_104 {dimension_numbers = #tpu.dot_dimension_numbers<[1], [0], [0], [1], [0, 0, 1, 1], [], []>} : vector<8x8xbf16>, vector<8x8xbf16>, vector<8x8xf32> -> vector<8x8xf32>
      %201 = arith.addf %198, %200 : vector<8x8xf32>
      %c3_105 = arith.constant 3 : index
      %c0_106 = arith.constant 0 : index
      %c0_107 = arith.constant 0 : index
      %202 = vector.load %arg21[%c3_105, %c0_106, %c0_107] : memref<4x8x8xf32, #tpu.memory_space<vmem>>, vector<1x8x8xf32>
      %203 = vector.shape_cast %202 : vector<1x8x8xf32> to vector<8x8xf32>
      %204 = vector.shape_cast %201 : vector<8x8xf32> to vector<1x8x8xf32>
      tpu.vector_store %arg21[%c3_105, %c0_106, %c0_107], %204 {strides = array<i32>} : memref<4x8x8xf32, #tpu.memory_space<vmem>>, vector<1x8x8xf32>,
      %c3_108 = arith.constant 3 : index
      %c0_109 = arith.constant 0 : index
      %c0_110 = arith.constant 0 : index
      %205 = vector.load %arg19[%c3_108, %c0_109, %c0_110] : memref<4x8x1xf32, #tpu.memory_space<vmem>>, vector<1x8x1xf32>
      %206 = vector.shape_cast %205 : vector<1x8x1xf32> to vector<8x1xf32>
      %207 = vector.shape_cast %180 : vector<8x1xf32> to vector<1x8x1xf32>
      tpu.vector_store %arg19[%c3_108, %c0_109, %c0_110], %207 {strides = array<i32>} : memref<4x8x1xf32, #tpu.memory_space<vmem>>, vector<1x8x1xf32>,
    } else {
    }
    %c0_i32_3 = arith.constant 0 : i32
    %9 = arith.cmpi eq, %arg2, %c0_i32_3 : i32
    %10 = arith.extui %9 : i1 to i32
    %c0_i32_4 = arith.constant 0 : i32
    %11 = arith.cmpi ne, %10, %c0_i32_4 : i32
    scf.if %11 {
      %c0 = arith.constant 0 : index
      %c0_5 = arith.constant 0 : index
      %c0_6 = arith.constant 0 : index
      %12 = vector.load %arg3[%c0, %c0_5, %c0_6] : memref<1x8x32xf32, #tpu.memory_space<vmem>>, vector<1x8x32xf32>
      %13 = vector.shape_cast %12 : vector<1x8x32xf32> to vector<8x32xf32>
      %cst = arith.constant 0.000000e+00 : f32
      %14 = vector.broadcast %cst : f32 to vector<8x32xf32>
      %c0_7 = arith.constant 0 : index
      %c0_8 = arith.constant 0 : index
      %c0_9 = arith.constant 0 : index
      %15 = vector.load %arg21[%c0_7, %c0_8, %c0_9] : memref<4x8x8xf32, #tpu.memory_space<vmem>>, vector<1x8x8xf32>
      %16 = vector.shape_cast %15 : vector<1x8x8xf32> to vector<8x8xf32>
      %c0_10 = arith.constant 0 : index
      %c0_11 = arith.constant 0 : index
      %c0_12 = arith.constant 0 : index
      %17 = vector.load %arg20[%c0_10, %c0_11, %c0_12] : memref<4x8x1xf32, #tpu.memory_space<vmem>>, vector<1x8x1xf32>
      %18 = vector.shape_cast %17 : vector<1x8x1xf32> to vector<8x1xf32>
      %19 = tpu.reciprocal %18 {approx = true} : vector<8x1xf32> -> vector<8x1xf32>
      %20 = vector.broadcast %19 : vector<8x1xf32> to vector<8x8xf32>
      %21 = arith.mulf %16, %20 : vector<8x8xf32>
      %22 = arith.truncf %21 : vector<8x8xf32> to vector<8x8xbf16>
      %c0_13 = arith.constant 0 : index
      %c0_14 = arith.constant 0 : index
      %23 = vector.load %arg9[%c0_13, %c0_14] : memref<32x32xbf16, #tpu.memory_space<vmem>>, vector<8x32xbf16>
      %cst_15 = arith.constant dense<0.000000e+00> : vector<8x32xf32>
      %24 = tpu.matmul %22, %23, %cst_15 {dimension_numbers = #tpu.dot_dimension_numbers<[1], [0], [0], [1], [0, 0, 1, 1], [], []>} : vector<8x8xbf16>, vector<8x32xbf16>, vector<8x32xf32> -> vector<8x32xf32>
      %25 = arith.addf %14, %24 : vector<8x32xf32>
      %c1 = arith.constant 1 : index
      %c0_16 = arith.constant 0 : index
      %c0_17 = arith.constant 0 : index
      %26 = vector.load %arg21[%c1, %c0_16, %c0_17] : memref<4x8x8xf32, #tpu.memory_space<vmem>>, vector<1x8x8xf32>
      %27 = vector.shape_cast %26 : vector<1x8x8xf32> to vector<8x8xf32>
      %c1_18 = arith.constant 1 : index
      %c0_19 = arith.constant 0 : index
      %c0_20 = arith.constant 0 : index
      %28 = vector.load %arg20[%c1_18, %c0_19, %c0_20] : memref<4x8x1xf32, #tpu.memory_space<vmem>>, vector<1x8x1xf32>
      %29 = vector.shape_cast %28 : vector<1x8x1xf32> to vector<8x1xf32>
      %30 = tpu.reciprocal %29 {approx = true} : vector<8x1xf32> -> vector<8x1xf32>
      %31 = vector.broadcast %30 : vector<8x1xf32> to vector<8x8xf32>
      %32 = arith.mulf %27, %31 : vector<8x8xf32>
      %33 = arith.truncf %32 : vector<8x8xf32> to vector<8x8xbf16>
      %c8 = arith.constant 8 : index
      %c0_21 = arith.constant 0 : index
      %34 = vector.load %arg9[%c8, %c0_21] : memref<32x32xbf16, #tpu.memory_space<vmem>>, vector<8x32xbf16>
      %cst_22 = arith.constant dense<0.000000e+00> : vector<8x32xf32>
      %35 = tpu.matmul %33, %34, %cst_22 {dimension_numbers = #tpu.dot_dimension_numbers<[1], [0], [0], [1], [0, 0, 1, 1], [], []>} : vector<8x8xbf16>, vector<8x32xbf16>, vector<8x32xf32> -> vector<8x32xf32>
      %36 = arith.addf %25, %35 : vector<8x32xf32>
      %c2 = arith.constant 2 : index
      %c0_23 = arith.constant 0 : index
      %c0_24 = arith.constant 0 : index
      %37 = vector.load %arg21[%c2, %c0_23, %c0_24] : memref<4x8x8xf32, #tpu.memory_space<vmem>>, vector<1x8x8xf32>
      %38 = vector.shape_cast %37 : vector<1x8x8xf32> to vector<8x8xf32>
      %c2_25 = arith.constant 2 : index
      %c0_26 = arith.constant 0 : index
      %c0_27 = arith.constant 0 : index
      %39 = vector.load %arg20[%c2_25, %c0_26, %c0_27] : memref<4x8x1xf32, #tpu.memory_space<vmem>>, vector<1x8x1xf32>
      %40 = vector.shape_cast %39 : vector<1x8x1xf32> to vector<8x1xf32>
      %41 = tpu.reciprocal %40 {approx = true} : vector<8x1xf32> -> vector<8x1xf32>
      %42 = vector.broadcast %41 : vector<8x1xf32> to vector<8x8xf32>
      %43 = arith.mulf %38, %42 : vector<8x8xf32>
      %44 = arith.truncf %43 : vector<8x8xf32> to vector<8x8xbf16>
      %c16 = arith.constant 16 : index
      %c0_28 = arith.constant 0 : index
      %45 = vector.load %arg9[%c16, %c0_28] : memref<32x32xbf16, #tpu.memory_space<vmem>>, vector<8x32xbf16>
      %cst_29 = arith.constant dense<0.000000e+00> : vector<8x32xf32>
      %46 = tpu.matmul %44, %45, %cst_29 {dimension_numbers = #tpu.dot_dimension_numbers<[1], [0], [0], [1], [0, 0, 1, 1], [], []>} : vector<8x8xbf16>, vector<8x32xbf16>, vector<8x32xf32> -> vector<8x32xf32>
      %47 = arith.addf %36, %46 : vector<8x32xf32>
      %c3 = arith.constant 3 : index
      %c0_30 = arith.constant 0 : index
      %c0_31 = arith.constant 0 : index
      %48 = vector.load %arg21[%c3, %c0_30, %c0_31] : memref<4x8x8xf32, #tpu.memory_space<vmem>>, vector<1x8x8xf32>
      %49 = vector.shape_cast %48 : vector<1x8x8xf32> to vector<8x8xf32>
      %c3_32 = arith.constant 3 : index
      %c0_33 = arith.constant 0 : index
      %c0_34 = arith.constant 0 : index
      %50 = vector.load %arg20[%c3_32, %c0_33, %c0_34] : memref<4x8x1xf32, #tpu.memory_space<vmem>>, vector<1x8x1xf32>
      %51 = vector.shape_cast %50 : vector<1x8x1xf32> to vector<8x1xf32>
      %52 = tpu.reciprocal %51 {approx = true} : vector<8x1xf32> -> vector<8x1xf32>
      %53 = vector.broadcast %52 : vector<8x1xf32> to vector<8x8xf32>
      %54 = arith.mulf %49, %53 : vector<8x8xf32>
      %55 = arith.truncf %54 : vector<8x8xf32> to vector<8x8xbf16>
      %c24 = arith.constant 24 : index
      %c0_35 = arith.constant 0 : index
      %56 = vector.load %arg9[%c24, %c0_35] : memref<32x32xbf16, #tpu.memory_space<vmem>>, vector<8x32xbf16>
      %cst_36 = arith.constant dense<0.000000e+00> : vector<8x32xf32>
      %57 = tpu.matmul %55, %56, %cst_36 {dimension_numbers = #tpu.dot_dimension_numbers<[1], [0], [0], [1], [0, 0, 1, 1], [], []>} : vector<8x8xbf16>, vector<8x32xbf16>, vector<8x32xf32> -> vector<8x32xf32>
      %58 = arith.addf %47, %57 : vector<8x32xf32>
      %59 = arith.addf %13, %58 : vector<8x32xf32>
      %c0_37 = arith.constant 0 : index
      %c0_38 = arith.constant 0 : index
      %60 = vector.load %arg10[%c0_37, %c0_38] : memref<1x32xf32, #tpu.memory_space<vmem>>, vector<1x32xf32>
      %61 = vector.shape_cast %60 : vector<1x32xf32> to vector<32xf32>
      %62 = vector.shape_cast %61 : vector<32xf32> to vector<1x32xf32>
      %63 = vector.broadcast %62 : vector<1x32xf32> to vector<8x32xf32>
      %64 = arith.addf %59, %63 : vector<8x32xf32>
      %c0_39 = arith.constant 0 : index
      %c0_40 = arith.constant 0 : index
      %65 = vector.load %arg11[%c0_39, %c0_40] : memref<1x32xf32, #tpu.memory_space<vmem>>, vector<1x32xf32>
      %66 = vector.shape_cast %65 : vector<1x32xf32> to vector<32xf32>
      %c0_41 = arith.constant 0 : index
      %c0_42 = arith.constant 0 : index
      %67 = vector.load %arg12[%c0_41, %c0_42] : memref<1x32xf32, #tpu.memory_space<vmem>>, vector<1x32xf32>
      %68 = vector.shape_cast %67 : vector<1x32xf32> to vector<32xf32>
      %cst_43 = arith.constant dense<0.000000e+00> : vector<8xf32>
      %69 = vector.multi_reduction <add>, %64, %cst_43 [1] : vector<8x32xf32> to vector<8xf32>
      %70 = vector.shape_cast %69 : vector<8xf32> to vector<8x1xf32>
      %cst_44 = arith.constant 3.200000e+01 : f32
      %71 = vector.broadcast %cst_44 : f32 to vector<8x1xf32>
      %72 = arith.divf %70, %71 : vector<8x1xf32>
      %73 = vector.broadcast %72 : vector<8x1xf32> to vector<8x32xf32>
      %74 = arith.subf %64, %73 : vector<8x32xf32>
      %75 = arith.mulf %74, %74 : vector<8x32xf32>
      %cst_45 = arith.constant dense<0.000000e+00> : vector<8xf32>
      %76 = vector.multi_reduction <add>, %75, %cst_45 [1] : vector<8x32xf32> to vector<8xf32>
      %77 = vector.shape_cast %76 : vector<8xf32> to vector<8x1xf32>
      %cst_46 = arith.constant 3.200000e+01 : f32
      %78 = vector.broadcast %cst_46 : f32 to vector<8x1xf32>
      %79 = arith.divf %77, %78 : vector<8x1xf32>
      %80 = vector.broadcast %72 : vector<8x1xf32> to vector<8x32xf32>
      %81 = arith.subf %64, %80 : vector<8x32xf32>
      %cst_47 = arith.constant 9.99999974E-6 : f32
      %82 = vector.broadcast %cst_47 : f32 to vector<8x1xf32>
      %83 = arith.addf %79, %82 : vector<8x1xf32>
      %84 = math.rsqrt %83 : vector<8x1xf32>
      %85 = vector.broadcast %84 : vector<8x1xf32> to vector<8x32xf32>
      %86 = arith.mulf %81, %85 : vector<8x32xf32>
      %87 = vector.shape_cast %66 : vector<32xf32> to vector<1x32xf32>
      %88 = vector.broadcast %87 : vector<1x32xf32> to vector<8x32xf32>
      %89 = arith.mulf %86, %88 : vector<8x32xf32>
      %90 = vector.shape_cast %68 : vector<32xf32> to vector<1x32xf32>
      %91 = vector.broadcast %90 : vector<1x32xf32> to vector<8x32xf32>
      %92 = arith.addf %89, %91 : vector<8x32xf32>
      %93 = arith.truncf %92 : vector<8x32xf32> to vector<8x32xbf16>
      %c0_48 = arith.constant 0 : index
      %c0_49 = arith.constant 0 : index
      %94 = vector.load %arg13[%c0_48, %c0_49] : memref<32x128xbf16, #tpu.memory_space<vmem>>, vector<32x128xbf16>
      %cst_50 = arith.constant dense<0.000000e+00> : vector<8x128xf32>
      %95 = tpu.matmul %93, %94, %cst_50 {dimension_numbers = #tpu.dot_dimension_numbers<[1], [0], [0], [1], [0, 0, 1, 1], [], []>} : vector<8x32xbf16>, vector<32x128xbf16>, vector<8x128xf32> -> vector<8x128xf32>
      %c0_51 = arith.constant 0 : index
      %c0_52 = arith.constant 0 : index
      %96 = vector.load %arg14[%c0_51, %c0_52] : memref<1x128xf32, #tpu.memory_space<vmem>>, vector<1x128xf32>
      %97 = vector.shape_cast %96 : vector<1x128xf32> to vector<128xf32>
      %98 = vector.shape_cast %97 : vector<128xf32> to vector<1x128xf32>
      %99 = vector.broadcast %98 : vector<1x128xf32> to vector<8x128xf32>
      %100 = arith.addf %95, %99 : vector<8x128xf32>
      %cst_53 = arith.constant 5.000000e-01 : f32
      %101 = vector.broadcast %cst_53 : f32 to vector<8x128xf32>
      %102 = arith.mulf %101, %100 : vector<8x128xf32>
      %cst_54 = arith.constant 0.707106769 : f32
      %103 = vector.broadcast %cst_54 : f32 to vector<8x128xf32>
      %104 = arith.mulf %100, %103 : vector<8x128xf32>
      %105 = math.erf %104 : vector<8x128xf32>
      %cst_55 = arith.constant 1.000000e+00 : f32
      %106 = vector.broadcast %cst_55 : f32 to vector<8x128xf32>
      %107 = arith.addf %106, %105 : vector<8x128xf32>
      %108 = arith.mulf %102, %107 : vector<8x128xf32>
      %109 = arith.truncf %108 : vector<8x128xf32> to vector<8x128xbf16>
      %c0_56 = arith.constant 0 : index
      %c0_57 = arith.constant 0 : index
      %110 = vector.load %arg15[%c0_56, %c0_57] : memref<128x32xbf16, #tpu.memory_space<vmem>>, vector<128x32xbf16>
      %cst_58 = arith.constant dense<0.000000e+00> : vector<8x32xf32>
      %111 = tpu.matmul %109, %110, %cst_58 {dimension_numbers = #tpu.dot_dimension_numbers<[1], [0], [0], [1], [0, 0, 1, 1], [], []>} : vector<8x128xbf16>, vector<128x32xbf16>, vector<8x32xf32> -> vector<8x32xf32>
      %c0_59 = arith.constant 0 : index
      %c0_60 = arith.constant 0 : index
      %112 = vector.load %arg16[%c0_59, %c0_60] : memref<1x32xf32, #tpu.memory_space<vmem>>, vector<1x32xf32>
      %113 = vector.shape_cast %112 : vector<1x32xf32> to vector<32xf32>
      %114 = vector.shape_cast %113 : vector<32xf32> to vector<1x32xf32>
      %115 = vector.broadcast %114 : vector<1x32xf32> to vector<8x32xf32>
      %116 = arith.addf %111, %115 : vector<8x32xf32>
      %117 = arith.addf %64, %116 : vector<8x32xf32>
      %c0_61 = arith.constant 0 : index
      %c0_62 = arith.constant 0 : index
      %c0_63 = arith.constant 0 : index
      %118 = vector.load %arg17[%c0_61, %c0_62, %c0_63] : memref<1x8x32xf32, #tpu.memory_space<vmem>>, vector<1x8x32xf32>
      %119 = vector.shape_cast %118 : vector<1x8x32xf32> to vector<8x32xf32>
      %120 = vector.shape_cast %117 : vector<8x32xf32> to vector<1x8x32xf32>
      tpu.vector_store %arg17[%c0_61, %c0_62, %c0_63], %120 {strides = array<i32>} : memref<1x8x32xf32, #tpu.memory_space<vmem>>, vector<1x8x32xf32>,
    } else {
    }
    return
  }
  func.func @transform_0(%arg0: i32, %arg1: i32, %arg2: i32) -> (i32, i32, i32) {
    %c0_i32 = arith.constant 0 : i32
    %c0_i32_0 = arith.constant 0 : i32
    return %arg0, %arg1, %c0_i32 : i32, i32, i32
  }
  func.func @transform_1(%arg0: i32, %arg1: i32, %arg2: i32) -> (i32, i32, i32) {
    %c0_i32 = arith.constant 0 : i32
    %c0_i32_0 = arith.constant 0 : i32
    return %arg0, %arg2, %c0_i32 : i32, i32, i32
  }
  func.func @transform_2(%arg0: i32, %arg1: i32, %arg2: i32) -> (i32, i32) {
    %c0_i32 = arith.constant 0 : i32
    %c0_i32_0 = arith.constant 0 : i32
    %c0_i32_1 = arith.constant 0 : i32
    return %c0_i32, %c0_i32_0 : i32, i32
  }
  func.func @transform_3(%arg0: i32, %arg1: i32, %arg2: i32) -> (i32, i32) {
    %c0_i32 = arith.constant 0 : i32
    %c0_i32_0 = arith.constant 0 : i32
    %c0_i32_1 = arith.constant 0 : i32
    return %c0_i32, %c0_i32_0 : i32, i32
  }
  func.func @transform_4(%arg0: i32, %arg1: i32, %arg2: i32) -> (i32, i32) {
    %c0_i32 = arith.constant 0 : i32
    %c0_i32_0 = arith.constant 0 : i32
    %c0_i32_1 = arith.constant 0 : i32
    return %c0_i32, %c0_i32_0 : i32, i32
  }
  func.func @transform_5(%arg0: i32, %arg1: i32, %arg2: i32) -> (i32, i32) {
    %c0_i32 = arith.constant 0 : i32
    %c0_i32_0 = arith.constant 0 : i32
    %c0_i32_1 = arith.constant 0 : i32
    return %c0_i32, %c0_i32_0 : i32, i32
  }
  func.func @transform_6(%arg0: i32, %arg1: i32, %arg2: i32) -> (i32, i32) {
    %c0_i32 = arith.constant 0 : i32
    %c0_i32_0 = arith.constant 0 : i32
    %c0_i32_1 = arith.constant 0 : i32
    return %c0_i32, %c0_i32_0 : i32, i32
  }
  func.func @transform_7(%arg0: i32, %arg1: i32, %arg2: i32) -> (i32, i32) {
    %c0_i32 = arith.constant 0 : i32
    %c0_i32_0 = arith.constant 0 : i32
    %c0_i32_1 = arith.constant 0 : i32
    return %c0_i32, %c0_i32_0 : i32, i32
  }
  func.func @transform_8(%arg0: i32, %arg1: i32, %arg2: i32) -> (i32, i32) {
    %c0_i32 = arith.constant 0 : i32
    %c0_i32_0 = arith.constant 0 : i32
    %c0_i32_1 = arith.constant 0 : i32
    return %c0_i32, %c0_i32_0 : i32, i32
  }
  func.func @transform_9(%arg0: i32, %arg1: i32, %arg2: i32) -> (i32, i32) {
    %c0_i32 = arith.constant 0 : i32
    %c0_i32_0 = arith.constant 0 : i32
    %c0_i32_1 = arith.constant 0 : i32
    return %c0_i32, %c0_i32_0 : i32, i32
  }
  func.func @transform_10(%arg0: i32, %arg1: i32, %arg2: i32) -> (i32, i32) {
    %c0_i32 = arith.constant 0 : i32
    %c0_i32_0 = arith.constant 0 : i32
    %c0_i32_1 = arith.constant 0 : i32
    return %c0_i32, %c0_i32_0 : i32, i32
  }
  func.func @transform_11(%arg0: i32, %arg1: i32, %arg2: i32) -> (i32, i32) {
    %c0_i32 = arith.constant 0 : i32
    %c0_i32_0 = arith.constant 0 : i32
    %c0_i32_1 = arith.constant 0 : i32
    return %c0_i32, %c0_i32_0 : i32, i32
  }
  func.func @transform_12(%arg0: i32, %arg1: i32, %arg2: i32) -> (i32, i32) {
    %c0_i32 = arith.constant 0 : i32
    %c0_i32_0 = arith.constant 0 : i32
    %c0_i32_1 = arith.constant 0 : i32
    return %c0_i32, %c0_i32_0 : i32, i32
  }
  func.func @transform_13(%arg0: i32, %arg1: i32, %arg2: i32) -> (i32, i32) {
    %c0_i32 = arith.constant 0 : i32
    %c0_i32_0 = arith.constant 0 : i32
    %c0_i32_1 = arith.constant 0 : i32
    return %c0_i32, %c0_i32_0 : i32, i32
  }
  func.func @transform_14(%arg0: i32, %arg1: i32, %arg2: i32) -> (i32, i32, i32) {
    %c0_i32 = arith.constant 0 : i32
    %c0_i32_0 = arith.constant 0 : i32
    return %arg0, %arg1, %c0_i32 : i32, i32, i32
  }
}

</mosaic_0001>

<bundles_post_ra>
// kernel: tpu_custom_call.1
= control target key start
LH: loop header
LB: loop body
LE: loop exit
PB: predicated region body
PF: predicated region fallthrough
CT: control target
= control target key end

     0   :  { %19 = vsyncpa [#allocation7], 0  ;;  %s2931_s0 = inlined_call_operand.vmem [shape: f32[2,8,32], index: 0, kind: input, shape index: {}]   ;;  %s2932_s1 = inlined_call_operand.vmem [shape: f32[2,8,32], index: 1, kind: input, shape index: {}]   ;;  %s2933_s2 = inlined_call_operand.vmem [shape: f32[1,32], index: 2, kind: input, shape index: {}]   ;;  %s2934_s3 = inlined_call_operand.vmem [shape: f32[1,32], index: 3, kind: input, shape index: {}]   ;;  %s2935_s4 = inlined_call_operand.vmem [shape: bf16[32,32], index: 4, kind: input, shape index: {}]   ;;  %s2936_s5 = inlined_call_operand.vmem [shape: bf16[32,64], index: 5, kind: input, shape index: {}]   ;;  %s2937_s6 = inlined_call_operand.vmem [shape: bf16[32,32], index: 6, kind: input, shape index: {}]   ;;  %s2938_s7 = inlined_call_operand.vmem [shape: f32[1,32], index: 7, kind: input, shape index: {}]   ;;  %s2939_s8 = inlined_call_operand.vmem [shape: f32[1,32], index: 8, kind: input, shape index: {}]   ;;  %s2940_s9 = inlined_call_operand.vmem [shape: f32[1,32], index: 9, kind: input, shape index: {}]   ;;  %s2941_s10 = inlined_call_operand.hbm [shape: bf16[32,128], index: 10, kind: input, shape index: {}]   ;;  %s2942_s11 = inlined_call_operand.hbm [shape: f32[1,128], index: 11, kind: input, shape index: {}]   ;;  %s2943_s12 = inlined_call_operand.vmem [shape: bf16[128,32], index: 12, kind: input, shape index: {}]   ;;  %s2944_s13 = inlined_call_operand.vmem [shape: f32[1,32], index: 13, kind: input, shape index: {}]   ;;  %s2945_s14 = inlined_call_operand.hbm [shape: f32[2,8,32], index: 14, kind: output, shape index: {}]  }
   0x1   :  { %20 = vsyncpa [#allocation10], 0 }
   0x2   :  { %21 = vsyncpa [#allocation8], 0 }
   0x3   :  { %23 = vsyncpa [#allocation8 + $0x1], 0  ;;  %s2495_s29 = smov 0   ;;  %s2497_s30 = smov 0  }
   0x4   :  { %s2499_s15 = smov 0   ;;  %s2501_s16 = smov 0  }
   0x5   :  { %s2503_s17 = smov 0   ;;  %s2505_s18 = smov 0  }
   0x6 LB: > { %2953 = sst [smem:[#allocation15_spill]] %s2382_s29  ;;  %s1915_s19 = sadd.s32 4294967295, %s2402_s18   ;;  %s2402_s18 = sphi %s2505_s18, %s29_s18   ;;  %s2398_s17 = sphi %s2503_s17, %s2972_s17   ;;  %s2394_s16 = sphi %s2501_s16, %s2971_s16   ;;  %s2390_s15 = sphi %s2499_s15, %s2970_s15   ;;  %s2386_s30 = sphi %s2497_s30, %s2974_s30   ;;  %s2382_s29 = sphi %s2495_s29, %s2973_s29  }
   0x7   : > { %2954 = sst [smem:[#allocation16_spill]] %s2390_s15  ;;  %s1916_s20 = sadd.s32 4294967294, %s2402_s18  }
   0x8   : > { %2955 = sst [smem:[#allocation17_spill]] %s2398_s17  ;;  %s48_s21 = sadd.s32 1, %s2398_s17 }
   0x9   : > { %2956 = sst [smem:[#allocation18_spill]] %s2402_s18  ;;  %s365_s22 = sadd.s32 1, %s2390_s15 }
   0xa   : > { %p50_p0 = scmp.ge.s32.totalorder %s48_s21, 2  ;;  %p375_p1 = scmp.ne.s32.totalorder %s2390_s15, %s2386_s30 }
   0xb   : > { %p376_p2 = scmp.eq.s32.totalorder %s1915_s19, 1  ;;  %p381_p3 = scmp.ne.s32.totalorder %s2386_s30, %s2382_s29 }
   0xc   : > { %s2976_s21 = smov (%p50_p0, %s48_s21), 0  ;;  %p382_p5 = scmp.eq.s32.totalorder %s1916_s20, 1 }
   0xd   : > { %2957 = sst [smem:[#allocation19_spill]] %s2976_s21  ;;  %p2535_p4 = por %p376_p2, %p375_p1 }
   0xe   : > { %s360_s24 = ssub.s32 %s2398_s17, %s2976_s21  ;;  %p1917_p6 = scmp.ge.s32.totalorder %s2402_s18, 1 }
   0xf   : > { %p363_p7 = scmp.eq.s32.totalorder %s360_s24, 0  ;;  %p2542_p8 = por %p382_p5, %p381_p3 }
  0x10   : > { %p389_p9 = scmp.lt.s32.totalorder %s2402_s18, 3  ;;  %p2554_p11 = scmp.eq.s32.totalorder %s1915_s19, 0 }
  0x11   : > { %s2959_s25 = scalar_select %p2542_p8, 1, 0 }
  0x12   : > { %s2548_s26 = scalar_select %p363_p7, %s2390_s15, %s365_s22  }
  0x13   : > { %2960 = sst [smem:[#allocation20_spill]] %s2959_s25  ;;  %p2550_p10 = pnand %p1917_p6, %p389_p9 }
  0x14   : > { %2961 = sst [smem:[#allocation21_spill]] %s2548_s26  ;;  %s2404_s20 = smov [#allocation6]  }
  0x15   : > { %p2138_p12 = pneg %p2550_p10  ;;  %s425_s24 = sshll.u32 %s2404_s20, 4  ;;  %s426_s24 = int_to_ptr.vmem [resolvable:$true] %s425_s24 }
  0x16   : > { %s2405_s22 = smov [#allocation9]   ;;  %s2277_s19 = scalar_lea.vmem %s426_s24, 256 }
  0x17   : > { %p2562_p13 = pnand %p2554_p11, %p2138_p12  ;;  %s439_s17 = sshll.u32 %s2405_s22, 4  ;;  %s440_s17 = int_to_ptr.vmem [resolvable:$true] %s439_s17 }
  0x18   : > { %p2278_p1 = scmp.ne.s32.totalorder %s426_s24, %s2277_s19  ;;  %p2285_p5 = scmp.lt.s32.totalorder %s426_s24, %s426_s24 }
  0x19   : > { %p2268_p0 = pneg %p2562_p13  ;;  %p2286_p6 = scmp.lt.s32.totalorder %s2277_s19, %s2277_s19 }
  0x1b   : > { %p2280_p2 = pnand %p2278_p1, %p2268_p0  ;;  %p2287_p7 = por %p2286_p6, %p2285_p5 }
  0x1d   : > { %p2281_p3 = pneg %p2280_p2 }
  0x1f   : > { %p2288_p9 = pnand %p2287_p7, %p2281_p3 }
  0x21   : > { %2291 = shalt.err (!%p2288_p9)
}
  0x22   : > { %s2406_s20 = smov 64   ;;  %s2407_s26 = smov 4  }
  0x23   : > { %2141 = dma.hbm_to_vmem [thread:$0]  (!%p2562_p13), %s2941_s10, 256, %s426_s24, [#allocation7], %s2406_s20, %s2406_s20, %s2407_s26  }
  0x24   : > { %s2303_s25 = scalar_lea.vmem %s440_s17, 16  ;;  %s2310_s29 = scalar_lea.vmem %s440_s17, 32 }
  0x25   : > { %p2304_p12 = scmp.ne.s32.totalorder %s440_s17, %s2303_s25  ;;  %p2311_p8 = scmp.lt.s32.totalorder %s440_s17, %s440_s17 }
  0x26   : > { %p2312_p5 = scmp.lt.s32.totalorder %s2310_s29, %s2303_s25 }
  0x27   : > { %p2306_p1 = pnand %p2304_p12, %p2268_p0 }
  0x28   : > { %p2313_p3 = por %p2312_p5, %p2311_p8 }
  0x29   : > { %p2307_p2 = pneg %p2306_p1 }
  0x2b   : > { %p2314_p6 = pnand %p2313_p3, %p2307_p2 }
  0x2d   : > { %2317 = shalt.err (!%p2314_p6)
}
  0x2e   : > { %2144 = dma.hbm_to_vmem [thread:$0]  (!%p2562_p13), %s2942_s11, 16, %s440_s17, [#allocation10]  }
  0x2f   : > { %478 = sbr.rel (%p2550_p10) target bundleno = 2419 (0x973), region = 76 }
  0x34   : > { %2369 = dma.done.wait (%p2554_p11), [#allocation7], 256  }
  0x35   : > { %2371 = vsyncadd (%p2554_p11), [#allocation7], 4294967040 }
  0x36   : > { %2373 = dma.done.wait (%p2554_p11), [#allocation10], 16  }
  0x37   : > { %2375 = vsyncadd (%p2554_p11), [#allocation10], 4294967280  ;;  %p537_p8 = scmp.lt.s32.totalorder %s2394_s16, 1  ;;  %vm559_vm0 = vcmask 261120   ;;  %v2219_v14 = vld [vmem:[%s2935_s4 + $0x8] sm:$0xff]   ;;  %v2408_v15 = vmov 0.0   ;;  %v767_v60 = vlaneseq }
  0x38   : > { %2012 = vmatprep.subr.bf16.mxu0 %v2408_v15  ;;  %2034 = vmatprep.subr.bf16.mxu1 %v2408_v15  ;;  %v2220_v16 = vld [vmem:[%s2935_s4] sm:$0xff]   ;;  %vm2409_vm1 = vmmov 0   ;;  %v2221_v31 = vld [vmem:[%s2936_s5 + $0x8] sm:$0xff]   ;;  %vm661_vm2 = vcmask 64512   ;;  %vm650_vm3 = vcmask 257024   ;;  %s2411_s28 = smov 104  }
  0x39   : > { %s538_s29 = scalar_select %p537_p8, %s2394_s16, 1  ;;  %2013 = vmatpush3.bf16.msra.mxu0 %v2219_v14  ;;  %2016 = vmatprep.mubr.msk.bf16.mxu0 %vm2409_vm1, %v2408_v15  ;;  %v1927_v24 = vld [vmem:[%s2933_s2] ss:$0 sm:$0xff]  ;;  %662 = vst.msk [vmem:[#allocation5] sm:$0xff] %vm661_vm2, %v2408_v15  ;;  %663 = vst.msk [vmem:[#allocation5 + $0x8] sm:$0xff] %vm661_vm2, %v2408_v15  ;;  %v768_v61 = vshrl.u32 %v767_v60, 7 }
  0x3a   : > { %2014 = vmatprep.subr.bf16.mxu0 %v2408_v15  ;;  %2036 = vmatprep.mubr.msk.bf16.mxu1 %vm2409_vm1, %v2408_v15  ;;  %v1928_v26 = vld [vmem:[%s2934_s3] ss:$0 sm:$0xff]  ;;  %664 = vst.msk [vmem:[#allocation5 + $0x10] sm:$0xff] %vm661_vm2, %v2408_v15  ;;  %665 = vst.msk [vmem:[#allocation5 + $0x18] sm:$0xff] %vm661_vm2, %v2408_v15  ;;  %s2412_s24 = smov 112   ;;  %v772_v62 = vand.u32 127, %v767_v60 }
  0x3b   : > { %s1925_s15 = sshll.u32 %s538_s29, 3  ;;  %v2222_v34 = vld [vmem:[%s2936_s5] sm:$0xff]   ;;  %vm652_vm5 = vcmask 7168   ;;  %s2415_s20 = smov 96   ;;  %vm863_vm6 = vcmask 1043456  }
  0x3c   : > { %s543_s21 = scalar_lea.vmem %s2931_s0, %s1925_s15  ;;  %s550_s27 = scalar_lea.vmem %s2932_s1, %s1925_s15  ;;  %vm775_vm4 = vcmp.le.s32.totalorder %v772_v62, %v768_v61  ;;  %657 = vst.msk [vmem:[#allocation4] sm:$0xff] %vm652_vm5, %v2408_v15  ;;  %658 = vst.msk [vmem:[#allocation4 + $0x8] sm:$0xff] %vm652_vm5, %v2408_v15 }
  0x3d   : > { %v2602_v0 = vld [vmem:[%s543_s21] sm:$0xff]  ;;  %2015 = vmatpush3.bf16.msra.mxu0 %v2220_v16  ;;  %659 = vst.msk [vmem:[#allocation4 + $0x10] sm:$0xff] %vm652_vm5, %v2408_v15  ;;  %660 = vst.msk [vmem:[#allocation4 + $0x18] sm:$0xff] %vm652_vm5, %v2408_v15  ;;  %s2416_s22 = smov 88   ;;  %s2417_s19 = smov 80  }
  0x3e   : > { %v673_v1 = vld [vmem:[%s550_s27] sm:$0xff]  ;;  %v560_v2 = vsel %vm559_vm0, %v2602_v0, 0.0  ;;  %2020 = vmatprep.subr.bf16.mxu0 %v2408_v15  ;;  %s2410_s27 = smov 120   ;;  %s2418_s29 = smov 72  }
  0x3f   : > { %v677_v3 = vsel %vm559_vm0, %v673_v1, 0.0  ;;  %561 = vadd.xlane.f32.xlu0 %v560_v2  ;;  %s534_s25 = sand.u32 1, %s2386_s30   ;;  %s2419_s18 = smov [#allocation11]  }
  0x40   : > { %s1924_s26 = sshll.u32 %s534_s25, 3  ;;  %s2322_s21 = sshll.u32 %s2419_s18, 4  ;;  %s2323_s21 = int_to_ptr.vmem [resolvable:$false] %s2322_s21 }
  0x43   : > { %678 = vadd.xlane.f32.xlu0 %v677_v3 }
  0xc8   : > { %v562_v4 = vpop.xlane.xlu0 %561 }
  0xc9   : > { %v564_v5 = vmul.f32 0.03125, %v562_v4 }
  0xcb   : > { %v565_v6 = vsub.f32 %v2602_v0, %v564_v5  ;;  %v2413_v5 = vmov -1e+30  }
  0xcc   : > { %v679_v7 = vpop.xlane.xlu0 %678  ;;  %653 = vst.msk [vmem:[#allocation3] sm:$0xff] %vm652_vm5, %v2413_v5  ;;  %654 = vst.msk [vmem:[#allocation3 + $0x8] sm:$0xff] %vm652_vm5, %v2413_v5 }
  0xcd   : > { %v681_v8 = vmul.f32 0.03125, %v679_v7  ;;  %v566_v9 = vmul.f32 %v565_v6, %v565_v6  ;;  %655 = vst.msk [vmem:[#allocation3 + $0x10] sm:$0xff] %vm652_vm5, %v2413_v5  ;;  %656 = vst.msk [vmem:[#allocation3 + $0x18] sm:$0xff] %vm652_vm5, %v2413_v5  ;;  %v2414_v7 = vmov 0  }
  0xce   : > { %2217 = vset.pattern.permute.xlu0 %v2414_v7  ;;  %2218 = vset.pattern.permute.xlu1 %v2414_v7 }
  0xcf   : > { %v682_v10 = vsub.f32 %v673_v1, %v681_v8  ;;  %v567_v11 = vsel %vm559_vm0, %v566_v9, 0.0 }
  0xd0   : > { %568 = vadd.xlane.f32.xlu1 %v567_v11 }
  0xd1   : > { %v683_v12 = vmul.f32 %v682_v10, %v682_v10 }
  0xd3   : > { %v684_v13 = vsel %vm559_vm0, %v683_v12, 0.0 }
  0xd4   : > { %685 = vadd.xlane.f32.xlu1 %v684_v13 }
 0x159   : > { %v569_v17 = vpop.xlane.xlu1 %568 }
 0x15a   : > { %v570_v18 = vmul.f32 0.03125, %v569_v17 }
 0x15c   : > { %v571_v19 = vadd.f32 1e-05, %v570_v18 }
 0x15d   : > { %v686_v20 = vpop.xlane.xlu1 %685 }
 0x15e   : > { %2234 = vrsqrt.f32 %v571_v19  ;;  %v687_v21 = vmul.f32 0.03125, %v686_v20 }
 0x160   : > { %v688_v22 = vadd.f32 1e-05, %v687_v21 }
 0x162   : > { %2236 = vrsqrt.f32 %v688_v22 }
 0x16b   : > { %v2235_v23 = vpop.eup %2234 }
 0x16c   : > { %v573_v25 = vmul.f32 %v2235_v23, %v565_v6 }
 0x16e   : > { %v580_v27 = vmul.f32 %v1927_v24, %v573_v25 }
 0x16f   : > { %v2237_v28 = vpop.eup %2236 }
 0x170   : > { %v690_v29 = vmul.f32 %v2237_v28, %v682_v10  ;;  %v587_v30 = vadd.f32 %v1928_v26, %v580_v27  ;;  %v2704_v27 = vld [vmem:[#allocation3] sm:$0xff] }
 0x172   : > { %v588_v32 = vpack.c.bf16 %v587_v30, %v587_v30  ;;  %v697_v33 = vmul.f32 %v1927_v24, %v690_v29 }
 0x174   : > { %2017 = vmatmul.mubr.msk.bf16.vlgmr.msra.gmra.mxu0 %vm559_vm0, %v588_v32  ;;  %v704_v35 = vadd.f32 %v1928_v26, %v697_v33 }
 0x175   : > { %2021 = vmatpush3.bf16.msra.mxu0 %v2221_v31  ;;  %2024 = vmatprep.mubr.msk.bf16.mxu0 %vm2409_vm1, %v2408_v15  ;;  %v2714_v31 = vld [vmem:[#allocation3 + $0x8] sm:$0xff] }
 0x176   : > { %2022 = vmatprep.subr.bf16.mxu0 %v2408_v15  ;;  %v705_v36 = vpack.c.bf16 %v704_v35, %v704_v35  ;;  %v2724_v35 = vld [vmem:[#allocation3 + $0x10] sm:$0xff] }
 0x179   : > { %2023 = vmatpush3.bf16.msra.mxu0 %v2222_v34 }
 0x17a   : > { %2028 = vmatprep.subr.bf16.mxu0 %v2408_v15 }
 0x17c   : > { %2025 = vmatmul.mubr.msk.bf16.vlgmr.msra.gmra.mxu0 %vm559_vm0, %v705_v36 }
 0x17d   : > { %2030 = vmatprep.mubr.msk.bf16.mxu0 %vm2409_vm1, %v2408_v15 }
 0x234   : > { %v642_v37 = vpop.f32.mrf.mxu0 }
 0x235   : > { %v648_v38 = vmul.f32 0.35355338, %v642_v37 }
 0x236   : > { %v2018_v39 = vpop.f32.mrf.mxu0 }
 0x237   : > { %v649_v40 = vpack.c.bf16 %v648_v38, %v648_v38  ;;  %v2734_v39 = vld [vmem:[#allocation3 + $0x18] sm:$0xff] }
 0x238   : > { %v645_v41 = vpop.f32.mrf.mxu0 }
 0x239   : > { %651 = vst.msk [vmem:[#allocation2] sm:$0xf] %vm650_vm3, %v649_v40 }
 0x23a   : > { %v2019_v42 = vpop.f32.mrf.mxu0 }
 0x23c   : > { %v759_v43 = vpop.f32.mrf.mxu0 }
 0x23d   : > { %v2652_v44 = vpack.c.bf16 %v759_v43, %v759_v43 }
 0x23e   : > { %v2026_v45 = vpop.f32.mrf.mxu0 }
 0x23f   : > { %915 = vrot.lane.b32.xlu0 %v2652_v44, %s2410_s27  ;;  %v782_v46 = vsel %vm661_vm2, %v2652_v44, 0 }
 0x240   : > { %v762_v47 = vpop.f32.mrf.mxu0  ;;  %2029 = vmatpush3.bf16.xpose.msra.mxu0 %v782_v46  ;;  %v776_v48 = vld [vmem:[#allocation2] sm:$0xf] }
 0x241   : > { %v1939_v49 = vcombine.low %v776_v48, %v776_v48  ;;  %2040 = vmatprep.subr.bf16.mxu0 %v2408_v15 }
 0x242   : > { %v2027_v50 = vpop.f32.mrf.mxu0 }
 0x243   : > { %913 = vrot.lane.b32.xlu1 %v1939_v49, %s2410_s27  ;;  %1187 = vrot.lane.b32.xlu0 %v2652_v44, %s2411_s28 }
 0x247   : > { %1051 = vrot.lane.b32.xlu1 %v2652_v44, %s2412_s24  ;;  %2031 = vmatmul.mubr.msk.bf16.vlgmr.msra.gmra.mxu0 %vm661_vm2, %v776_v48 }
 0x248   : > { %2042 = vmatprep.mubr.msk.bf16.mxu0 %vm2409_vm1, %v2408_v15 }
 0x24b   : > { %1049 = vrot.lane.b32.xlu1 %v1939_v49, %s2412_s24  ;;  %s1967_s24 = sshll.u32 %s2394_s16, 7  ;;  %s1790_s16 = scalar_lea.sflag [#allocation8], %s534_s25 }
 0x24c   : > { %s2884_s15 = scalar_lea.hbm %s2945_s14, %s1967_s24 }
 0x24f   : > { %1185 = vrot.lane.b32.xlu1 %v1939_v49, %s2411_s28 }
 0x2b1   : > { %v916_v51 = vpop.permute.xlu0 %915 }
 0x2b2   : > { %v921_v52 = vsel %vm661_vm2, %v916_v51, 0 }
 0x2b3   : > { %2041 = vmatpush3.bf16.xpose.msra.mxu0 %v921_v52 }
 0x2b4   : > { %2052 = vmatprep.subr.bf16.mxu0 %v2408_v15 }
 0x2b5   : > { %v914_v53 = vpop.permute.xlu1 %913  ;;  %v1188_v56 = vpop.permute.xlu0 %1187 }
 0x2b6   : > { %v1193_v58 = vsel %vm661_vm2, %v1188_v56, 0 }
 0x2b9   : > { %v1052_v54 = vpop.permute.xlu1 %1051 }
 0x2ba   : > { %v1057_v55 = vsel %vm661_vm2, %v1052_v54, 0  ;;  %2043 = vmatmul.mubr.msk.bf16.vlgmr.msra.gmra.mxu0 %vm661_vm2, %v914_v53 }
 0x2bb   : > { %2053 = vmatpush3.bf16.xpose.msra.mxu0 %v1057_v55  ;;  %2054 = vmatprep.mubr.msk.bf16.mxu0 %vm2409_vm1, %v2408_v15 }
 0x2bc   : > { %2064 = vmatprep.subr.bf16.mxu0 %v2408_v15 }
 0x2bd   : > { %v1050_v57 = vpop.permute.xlu1 %1049 }
 0x2c1   : > { %v1186_v59 = vpop.permute.xlu1 %1185 }
 0x2c2   : > { %2055 = vmatmul.mubr.msk.bf16.vlgmr.msra.gmra.mxu0 %vm661_vm2, %v1050_v57 }
 0x2c3   : > { %2065 = vmatpush3.bf16.xpose.msra.mxu0 %v1193_v58  ;;  %2066 = vmatprep.mubr.msk.bf16.mxu0 %vm2409_vm1, %v2408_v15 }
 0x2c4   : > { %2076 = vmatprep.subr.bf16.mxu0 %v2408_v15 }
 0x2ca   : > { %2067 = vmatmul.mubr.msk.bf16.vlgmr.msra.gmra.mxu0 %vm661_vm2, %v1186_v59 }
 0x2cb   : > { %2078 = vmatprep.mubr.msk.bf16.mxu0 %vm2409_vm1, %v2408_v15 }
 0x307   : > { %v818_v63 = vpop.f32.mrf.mxu0 }
 0x308   : > { %v2679_v1 = vsel %vm775_vm4, %v818_v63, -1e+30 }
 0x309   : > { %v2032_v2 = vpop.f32.mrf.mxu0  ;;  %v826_v3 = vsel %vm661_vm2, %v2679_v1, -inf }
 0x30a   : > { %827 = vmax.xlane.f32.xlu0 %v826_v3 }
 0x30b   : > { %v821_v4 = vpop.f32.mrf.mxu0 }
 0x30d   : > { %v2033_v6 = vpop.f32.mrf.mxu0 }
 0x37a   : > { %v957_v8 = vpop.f32.mrf.mxu0 }
 0x37b   : > { %v963_v9 = vsel %vm775_vm4, %v957_v8, -1e+30 }
 0x37c   : > { %v2044_v10 = vpop.f32.mrf.mxu0  ;;  %v966_v11 = vsel %vm661_vm2, %v963_v9, -inf }
 0x37d   : > { %967 = vmax.xlane.f32.xlu1 %v966_v11 }
 0x37e   : > { %v960_v12 = vpop.f32.mrf.mxu0 }
 0x380   : > { %v2045_v13 = vpop.f32.mrf.mxu0 }
 0x382   : > { %v1093_v14 = vpop.f32.mrf.mxu0 }
 0x383   : > { %v1099_v16 = vsel %vm775_vm4, %v1093_v14, -1e+30 }
 0x384   : > { %v2056_v17 = vpop.f32.mrf.mxu0  ;;  %v1102_v18 = vsel %vm661_vm2, %v1099_v16, -inf }
 0x385   : > { %1103 = vmax.xlane.f32.xlu0 %v1102_v18 }
 0x386   : > { %v1096_v19 = vpop.f32.mrf.mxu0 }
 0x387   : > { %v841_v19 = vld [vmem:[#allocation4] sm:$0xff] }
 0x388   : > { %v2057_v20 = vpop.f32.mrf.mxu0 }
 0x38a   : > { %v1229_v21 = vpop.f32.mrf.mxu0 }
 0x38b   : > { %v2700_v22 = vsel %vm775_vm4, %v1229_v21, -1e+30 }
 0x38c   : > { %v2068_v23 = vpop.f32.mrf.mxu0  ;;  %v1238_v24 = vsel %vm661_vm2, %v2700_v22, -inf }
 0x38d   : > { %1239 = vmax.xlane.f32.xlu0 %v1238_v24 }
 0x38e   : > { %v1232_v25 = vpop.f32.mrf.mxu0 }
 0x390   : > { %v2069_v26 = vpop.f32.mrf.mxu0 }
 0x393   : > { %v828_v28 = vpop.xlane.xlu0 %827 }
 0x394   : > { %v2707_v29 = vmax.f32 %v2704_v27, %v828_v28 }
 0x396   : > { %v830_v30 = vsub.f32 %v2704_v27, %v2707_v29  ;;  %909 = vst.msk [vmem:[#allocation3] sm:$0xff] %vm652_vm5, %v2707_v29  ;;  %v1335_v27 = vld [vmem:[%s2937_s6] sm:$0xf] }
 0x397   : > { %v1401_v28 = vsel %vm863_vm6, %v1335_v27, 0  ;;  %v1455_v27 = vld [vmem:[%s2937_s6 + $0x8] sm:$0xf] }
 0x398   : > { %v831_v11 = vmul.f32 1.442695, %v830_v30 }
 0x3a3   : > { %835 = vperm.xlu0 %2217, %v2707_v29   ;;  %v982_v29 = vld [vmem:[#allocation4 + $0x8] sm:$0xff] }
 0x406   : > { %v968_v32 = vpop.xlane.xlu1 %967 }
 0x407   : > { %v2717_v33 = vmax.f32 %v2714_v31, %v968_v32 }
 0x409   : > { %v970_v34 = vsub.f32 %v2714_v31, %v2717_v33  ;;  %1048 = vst.msk [vmem:[#allocation3 + $0x8] sm:$0xff] %vm652_vm5, %v2717_v33  ;;  %975 = vperm.xlu1 %2218, %v2717_v33   ;;  %v1118_v33 = vld [vmem:[#allocation4 + $0x10] sm:$0xff] }
 0x40b   : > { %v971_v8 = vmul.f32 1.442695, %v970_v34 }
 0x40e   : > { %v1104_v36 = vpop.xlane.xlu0 %1103 }
 0x40f   : > { %v2727_v37 = vmax.f32 %v2724_v35, %v1104_v36 }
 0x411   : > { %v1106_v38 = vsub.f32 %v2724_v35, %v2727_v37  ;;  %1184 = vst.msk [vmem:[#allocation3 + $0x10] sm:$0xff] %vm652_vm5, %v2727_v37  ;;  %1111 = vperm.xlu1 %2218, %v2727_v37  }
 0x413   : > { %v1107_v14 = vmul.f32 1.442695, %v1106_v38  ;;  %v1254_v38 = vld [vmem:[#allocation4 + $0x18] sm:$0xff] }
 0x415   : > { %858 = vrot.lane.b32.xlu1 %v2652_v44, %s2415_s20  ;;  %s536_s20 = scalar_lea.vmem [#allocation11], %s1924_s26  ;;  %s2324_s26 = scalar_lea.vmem %s2323_s21, 256 }
 0x416   : > { %v1240_v40 = vpop.xlane.xlu0 %1239 }
 0x417   : > { %v2738_v41 = vmax.f32 %v2734_v39, %v1240_v40 }
 0x419   : > { %v1242_v42 = vsub.f32 %v2734_v39, %v2738_v41  ;;  %1320 = vst.msk [vmem:[#allocation3 + $0x18] sm:$0xff] %vm652_vm5, %v2738_v41  ;;  %1247 = vperm.xlu1 %2218, %v2738_v41  }
 0x41b   : > { %v1243_v13 = vmul.f32 1.442695, %v1242_v42 }
 0x41d   : > { %998 = vrot.lane.b32.xlu1 %v2652_v44, %s2416_s22  ;;  %s1804_s22 = sshll.u32 %s536_s20, 4  ;;  %s2886_s22 = int_to_ptr.vmem [resolvable:$true] %s1804_s22 }
 0x41e   : > { %v836_v43 = vpop.permute.xlu0 %835  ;;  %s2318_s17 = scalar_lea.vmem %s2886_s22, 128  ;;  %p2325_p0 = scmp.lt.s32.totalorder %s2886_s22, %s2323_s21 }
 0x41f   : > { %v838_v45 = vsub.f32 %v2679_v1, %v836_v43  ;;  %v1348_v43 = vld [vmem:[%s2937_s6 + $0x4] sm:$0xf]  ;;  %p2319_p10 = scmp.ne.s32.totalorder %s2886_s22, %s2318_s17  ;;  %p2326_p7 = scmp.lt.s32.totalorder %s2324_s26, %s2318_s17 }
 0x421   : > { %v839_v46 = vmul.f32 1.442695, %v838_v45  ;;  %1134 = vrot.lane.b32.xlu1 %v2652_v44, %s2417_s19  ;;  %v1355_v45 = vsel %vm863_vm6, %v1348_v43, 0  ;;  %p2320_p11 = pnand %p2319_p10, %p2535_p4  ;;  %p2327_p9 = por %p2326_p7, %p2325_p0 }
 0x422   : > { %2077 = vmatpush3.bf16.msra.mxu0 %v1355_v45 }
 0x423   : > { %2238 = vpow2.f32 %v839_v46  ;;  %2088 = vmatprep.subr.bf16.mxu0 %v2408_v15  ;;  %p2321_p13 = pneg %p2320_p11 }
 0x425   : > { %1270 = vrot.lane.b32.xlu1 %v2652_v44, %s2418_s29  ;;  %p2328_p12 = pnand %p2327_p9, %p2321_p13 }
 0x430   : > { %v2239_v47 = vpop.eup %2238 }
 0x431   : > { %v843_v48 = vsel %vm661_vm2, %v2239_v47, 0.0  ;;  %v856_v57 = vpack.c.bf16 %v2239_v47, %v2239_v47 }
 0x432   : > { %844 = vadd.xlane.f32.xlu0 %v843_v48 }
 0x484   : > { %v976_v49 = vpop.permute.xlu1 %975 }
 0x485   : > { %v978_v50 = vsub.f32 %v963_v9, %v976_v49 }
 0x487   : > { %v979_v51 = vmul.f32 1.442695, %v978_v50  ;;  %v849_v50 = vld [vmem:[#allocation5] sm:$0xff] }
 0x489   : > { %2240 = vpow2.f32 %v979_v51 }
 0x48c   : > { %v1112_v52 = vpop.permute.xlu1 %1111 }
 0x48d   : > { %v1114_v53 = vsub.f32 %v1099_v16, %v1112_v52 }
 0x48f   : > { %v1115_v54 = vmul.f32 1.442695, %v1114_v53 }
 0x490   : > { %v859_v55 = vpop.permute.xlu1 %858 }
 0x491   : > { %2242 = vpow2.f32 %v1115_v54  ;;  %v865_v56 = vsel %vm863_vm6, %v859_v55, 0 }
 0x492   : > { %2035 = vmatpush3.bf16.msra.mxu1 %v865_v56 }
 0x493   : > { %2046 = vmatprep.subr.bf16.mxu1 %v2408_v15 }
 0x494   : > { %v1248_v44 = vpop.permute.xlu1 %1247 }
 0x495   : > { %v1250_v58 = vsub.f32 %v2700_v22, %v1248_v44  ;;  %2037 = vmatmul.mubr.msk.bf16.vlgmr.msra.gmra.mxu1 %vm661_vm2, %v856_v57  ;;  %v990_v57 = vld [vmem:[#allocation5 + $0x8] sm:$0xff] }
 0x496   : > { %v2241_v59 = vpop.eup %2240  ;;  %2048 = vmatprep.mubr.msk.bf16.mxu1 %vm2409_vm1, %v2408_v15 }
 0x497   : > { %v1251_v60 = vmul.f32 1.442695, %v1250_v58  ;;  %v984_v61 = vsel %vm661_vm2, %v2241_v59, 0.0  ;;  %v997_v1 = vpack.c.bf16 %v2241_v59, %v2241_v59 }
 0x498   : > { %985 = vadd.xlane.f32.xlu1 %v984_v61  ;;  %v999_v62 = vpop.permute.xlu1 %998 }
 0x499   : > { %2244 = vpow2.f32 %v1251_v60  ;;  %v1004_v63 = vsel %vm863_vm6, %v999_v62, 0 }
 0x49a   : > { %2047 = vmatpush3.bf16.msra.mxu1 %v1004_v63  ;;  %2246 = vpow2.f32 %v971_v8 }
 0x49b   : > { %2058 = vmatprep.subr.bf16.mxu1 %v2408_v15  ;;  %2248 = vpow2.f32 %v831_v11 }
 0x49c   : > { %v1135_v2 = vpop.permute.xlu1 %1134  ;;  %2250 = vpow2.f32 %v1243_v13 }
 0x49d   : > { %v1140_v3 = vsel %vm863_vm6, %v1135_v2, 0  ;;  %2049 = vmatmul.mubr.msk.bf16.vlgmr.msra.gmra.mxu1 %vm661_vm2, %v997_v1  ;;  %2252 = vpow2.f32 %v1107_v14 }
 0x49e   : > { %v2243_v4 = vpop.eup %2242  ;;  %2059 = vmatpush3.bf16.msra.mxu1 %v1140_v3  ;;  %2060 = vmatprep.mubr.msk.bf16.mxu1 %vm2409_vm1, %v2408_v15  ;;  %v1515_v3 = vld [vmem:[%s2937_s6 + $0xc] sm:$0xf] }
 0x49f   : > { %v1120_v5 = vsel %vm661_vm2, %v2243_v4, 0.0  ;;  %2070 = vmatprep.subr.bf16.mxu1 %v2408_v15  ;;  %v1133_v7 = vpack.c.bf16 %v2243_v4, %v2243_v4 }
 0x4a0   : > { %1121 = vadd.xlane.f32.xlu0 %v1120_v5  ;;  %v1271_v6 = vpop.permute.xlu1 %1270  ;;  %v1126_v5 = vld [vmem:[#allocation5 + $0x10] sm:$0xff] }
 0x4a1   : > { %v1276_v9 = vsel %vm863_vm6, %v1271_v6, 0 }
 0x4a5   : > { %2061 = vmatmul.mubr.msk.bf16.vlgmr.msra.gmra.mxu1 %vm661_vm2, %v1133_v7 }
 0x4a6   : > { %v2245_v10 = vpop.eup %2244  ;;  %2071 = vmatpush3.bf16.msra.mxu1 %v1276_v9  ;;  %2072 = vmatprep.mubr.msk.bf16.mxu1 %vm2409_vm1, %v2408_v15  ;;  %v1520_v9 = vsel %vm863_vm6, %v1515_v3, 0 }
 0x4a7   : > { %v1256_v12 = vsel %vm661_vm2, %v2245_v10, 0.0  ;;  %2082 = vmatprep.subr.bf16.mxu1 %v2408_v15  ;;  %v1269_v16 = vpack.c.bf16 %v2245_v10, %v2245_v10  ;;  %v2247_v17 = vpop.eup %2246 }
 0x4a8   : > { %1257 = vadd.xlane.f32.xlu1 %v1256_v12  ;;  %v2249_v18 = vpop.eup %2248  ;;  %v983_v30 = vmul.f32 %v2247_v17, %v982_v29 }
 0x4a9   : > { %v2251_v20 = vpop.eup %2250  ;;  %v842_v21 = vmul.f32 %v2249_v18, %v841_v19 }
 0x4aa   : > { %v2253_v23 = vpop.eup %2252  ;;  %v1255_v39 = vmul.f32 %v2251_v20, %v1254_v38 }
 0x4ab   : > { %v1119_v34 = vmul.f32 %v2253_v23, %v1118_v33 }
 0x4ad   : > { %2073 = vmatmul.mubr.msk.bf16.vlgmr.msra.gmra.mxu1 %vm661_vm2, %v1269_v16  ;;  %v1262_v16 = vld [vmem:[#allocation5 + $0x18] sm:$0xff] }
 0x4ae   : > { %2084 = vmatprep.mubr.msk.bf16.mxu1 %vm2409_vm1, %v2408_v15  ;;  %2083 = vmatpush3.bf16.msra.mxu1 %v1401_v28 }
 0x4af   : > { %2094 = vmatprep.subr.bf16.mxu1 %v2408_v15 }
 0x4b6   : > { %993 = vperm.xlu0 %2217, %v2247_v17  }
 0x4b9   : > { %852 = vperm.xlu1 %2218, %v2249_v18  }
 0x4ba   : > { %1265 = vperm.xlu0 %2217, %v2251_v20  }
 0x4bb   : > { %v845_v22 = vpop.xlane.xlu0 %844 }
 0x4bc   : > { %v846_v24 = vadd.f32 %v845_v22, %v842_v21 }
 0x4bd   : > { %1129 = vperm.xlu1 %2218, %v2253_v23  }
 0x4be   : > { %848 = vst.msk [vmem:[#allocation4] sm:$0xff] %vm652_vm5, %v846_v24 }
 0x4c5   : > { %v1326_v25 = vld [vmem:[#allocation4] sm:$0xff] }
 0x4c6   : > { %2254 = vrcp.f32 %v1326_v25 }
 0x4d3   : > { %v2255_v26 = vpop.eup %2254 }
 0x4d4   : > { %1330 = vperm.xlu0 %2217, %v2255_v26  }
 0x521   : > { %v986_v31 = vpop.xlane.xlu1 %985 }
 0x522   : > { %v987_v32 = vadd.f32 %v986_v31, %v983_v30  ;;  %v1460_v30 = vsel %vm863_vm6, %v1455_v27, 0 }
 0x524   : > { %988 = vst.msk [vmem:[#allocation4 + $0x8] sm:$0xff] %vm652_vm5, %v987_v32 }
 0x529   : > { %v1122_v35 = vpop.xlane.xlu0 %1121 }
 0x52a   : > { %v1123_v36 = vadd.f32 %v1122_v35, %v1119_v34 }
 0x52b   : > { %v1339_v37 = vld [vmem:[#allocation4 + $0x8] sm:$0xff] }
 0x52c   : > { %1124 = vst.msk [vmem:[#allocation4 + $0x10] sm:$0xff] %vm652_vm5, %v1123_v36  ;;  %2256 = vrcp.f32 %v1339_v37 }
 0x531   : > { %v1258_v40 = vpop.xlane.xlu1 %1257  ;;  %v994_v53 = vpop.permute.xlu0 %993 }
 0x532   : > { %v1259_v41 = vadd.f32 %v1258_v40, %v1255_v39  ;;  %v996_v60 = vmul.f32 %v994_v53, %v990_v57 }
 0x533   : > { %v1446_v42 = vld [vmem:[#allocation4 + $0x10] sm:$0xff] }
 0x534   : > { %1260 = vst.msk [vmem:[#allocation4 + $0x18] sm:$0xff] %vm652_vm5, %v1259_v41  ;;  %2258 = vrcp.f32 %v1446_v42 }
 0x535   : > { %v853_v51 = vpop.permute.xlu1 %852  ;;  %v1266_v58 = vpop.permute.xlu0 %1265 }
 0x536   : > { %v855_v52 = vmul.f32 %v853_v51, %v849_v50  ;;  %v1268_v19 = vmul.f32 %v1266_v58, %v1262_v16 }
 0x539   : > { %v2257_v46 = vpop.eup %2256  ;;  %v1130_v6 = vpop.permute.xlu1 %1129 }
 0x53a   : > { %1343 = vperm.xlu1 %2218, %v2257_v46   ;;  %v1132_v11 = vmul.f32 %v1130_v6, %v1126_v5  ;;  %v2225_v5 = vld [vmem:[#allocation6] sm:$0xff]   ;;  %v2227_v6 = vld [vmem:[%s2943_s12 + $0x30] sm:$0xff]  }
 0x53b   : > { %v1506_v47 = vld [vmem:[#allocation4 + $0x18] sm:$0xff] }
 0x53c   : > { %2260 = vrcp.f32 %v1506_v47 }
 0x541   : > { %v2259_v48 = vpop.eup %2258 }
 0x542   : > { %1450 = vperm.xlu1 %2218, %v2259_v48  }
 0x549   : > { %v2261_v49 = vpop.eup %2260 }
 0x54a   : > { %1510 = vperm.xlu0 %2217, %v2261_v49  }
 0x54f   : > { %v1331_v63 = vpop.permute.xlu0 %1330 }
 0x555   : > { %v901_v54 = vpop.f32.mrf.mxu1 }
 0x556   : > { %v907_v55 = vadd.f32 %v901_v54, %v855_v52 }
 0x557   : > { %v2038_v56 = vpop.f32.mrf.mxu1 }
 0x558   : > { %908 = vst.msk [vmem:[#allocation5] sm:$0xff] %vm661_vm2, %v907_v55  ;;  %v1950_v56 = vld [vmem:[%s2938_s7] ss:$0 sm:$0xff] }
 0x559   : > { %v904_v44 = vpop.f32.mrf.mxu1 }
 0x55b   : > { %v2039_v59 = vpop.f32.mrf.mxu1 }
 0x55d   : > { %v1040_v61 = vpop.f32.mrf.mxu1 }
 0x55e   : > { %v1046_v62 = vadd.f32 %v1040_v61, %v996_v60 }
 0x55f   : > { %v2050_v1 = vpop.f32.mrf.mxu1  ;;  %v1325_v2 = vld [vmem:[#allocation5] sm:$0xff] }
 0x560   : > { %1047 = vst.msk [vmem:[#allocation5 + $0x8] sm:$0xff] %vm661_vm2, %v1046_v62  ;;  %v1333_v4 = vmul.f32 %v1331_v63, %v1325_v2 }
 0x561   : > { %v1043_v7 = vpop.f32.mrf.mxu1 }
 0x562   : > { %v1334_v8 = vpack.c.bf16 %v1333_v4, %v1333_v4  ;;  %v2224_v4 = vld [vmem:[#allocation6 + $0x8] sm:$0xff]  }
 0x563   : > { %v2051_v10 = vpop.f32.mrf.mxu1 }
 0x564   : > { %2085 = vmatmul.mubr.msk.bf16.vlgmr.msra.gmra.mxu1 %vm661_vm2, %v1334_v8 }
 0x565   : > { %v1176_v12 = vpop.f32.mrf.mxu1  ;;  %2095 = vmatpush3.bf16.msra.mxu1 %v1520_v9  ;;  %2096 = vmatprep.mubr.msk.bf16.mxu1 %vm2409_vm1, %v2408_v15 }
 0x566   : > { %v1182_v13 = vadd.f32 %v1176_v12, %v1132_v11  ;;  %2108 = vmatprep.subr.bf16.mxu1 %v2408_v15  ;;  %v1951_v11 = vld [vmem:[%s2939_s8] ss:$0 sm:$0xff] }
 0x567   : > { %v2062_v14 = vpop.f32.mrf.mxu1  ;;  %v1337_v25 = vld [vmem:[#allocation5 + $0x8] sm:$0xff] }
 0x568   : > { %1183 = vst.msk [vmem:[#allocation5 + $0x10] sm:$0xff] %vm661_vm2, %v1182_v13  ;;  %v1952_v13 = vld [vmem:[%s2940_s9] ss:$0 sm:$0xff] }
 0x569   : > { %v1179_v17 = vpop.f32.mrf.mxu1 }
 0x56b   : > { %v2063_v18 = vpop.f32.mrf.mxu1 }
 0x56c   : > { %v2228_v18 = vld [vmem:[%s2943_s12 + $0x28] sm:$0xff]  }
 0x56d   : > { %v1312_v20 = vpop.f32.mrf.mxu1 }
 0x56e   : > { %v1318_v21 = vadd.f32 %v1312_v20, %v1268_v19  ;;  %v2229_v19 = vld [vmem:[%s2943_s12 + $0x20] sm:$0xff]   ;;  %v2230_v20 = vld [vmem:[%s2943_s12 + $0x18] sm:$0xff]  }
 0x56f   : > { %v2074_v22 = vpop.f32.mrf.mxu1  ;;  %v1444_v31 = vld [vmem:[#allocation5 + $0x10] sm:$0xff] }
 0x570   : > { %1319 = vst.msk [vmem:[#allocation5 + $0x18] sm:$0xff] %vm661_vm2, %v1318_v21  ;;  %v2231_v21 = vld [vmem:[%s2943_s12 + $0x10] sm:$0xff]   ;;  %v2232_v22 = vld [vmem:[%s2943_s12 + $0x8] sm:$0xff]  }
 0x571   : > { %v1315_v23 = vpop.f32.mrf.mxu1 }
 0x572   : > { %v2233_v23 = vld [vmem:[%s2943_s12] sm:$0xff]  }
 0x573   : > { %v2075_v24 = vpop.f32.mrf.mxu1 }
 0x574   : > { %v1953_v24 = vld [vmem:[#allocation9] ss:$0 sm:$0xff] }
 0x577   : > { %v1504_v35 = vld [vmem:[#allocation5 + $0x18] sm:$0xff] }
 0x5b5   : > { %v1344_v26 = vpop.permute.xlu1 %1343 }
 0x5b6   : > { %v1346_v28 = vmul.f32 %v1344_v26, %v1337_v25 }
 0x5b8   : > { %v1347_v29 = vpack.c.bf16 %v1346_v28, %v1346_v28 }
 0x5ba   : > { %2079 = vmatmul.mubr.msk.bf16.vlgmr.msra.gmra.mxu0 %vm661_vm2, %v1347_v29 }
 0x5bb   : > { %2089 = vmatpush3.bf16.msra.mxu0 %v1460_v30  ;;  %2090 = vmatprep.mubr.msk.bf16.mxu0 %vm2409_vm1, %v2408_v15 }
 0x5bc   : > { %2100 = vmatprep.subr.bf16.mxu0 %v2408_v15 }
 0x5bd   : > { %v1451_v32 = vpop.permute.xlu1 %1450 }
 0x5be   : > { %v1453_v33 = vmul.f32 %v1451_v32, %v1444_v31 }
 0x5c0   : > { %v1454_v34 = vpack.c.bf16 %v1453_v33, %v1453_v33 }
 0x5c2   : > { %2091 = vmatmul.mubr.msk.bf16.vlgmr.msra.gmra.mxu0 %vm661_vm2, %v1454_v34 }
 0x5c3   : > { %2104 = vmatprep.mubr.msk.bf16.mxu0 %vm2409_vm1, %v2408_v15  ;;  %2101 = vmatpush3.bf16.msra.mxu0 %v2224_v4 }
 0x5c4   : > { %2102 = vmatprep.subr.bf16.mxu0 %v2408_v15 }
 0x5c5   : > { %v1511_v36 = vpop.permute.xlu0 %1510 }
 0x5c6   : > { %v1513_v37 = vmul.f32 %v1511_v36, %v1504_v35  ;;  %v1957_v35 = vld [vmem:[%s2944_s13] ss:$0 sm:$0xff] }
 0x5c7   : > { %2103 = vmatpush3.bf16.msra.mxu0 %v2225_v5 }
 0x5c8   : > { %v1514_v38 = vpack.c.bf16 %v1513_v37, %v1513_v37 }
 0x5ca   : > { %2097 = vmatmul.mubr.msk.bf16.vlgmr.msra.gmra.mxu1 %vm661_vm2, %v1514_v38 }
 0x5cb   : > { %2124 = vmatprep.mubr.msk.bf16.mxu1 %vm2409_vm1, %v2408_v15 }
 0x624   : > { %v1437_v39 = vpop.f32.mrf.mxu1 }
 0x626   : > { %v2086_v40 = vpop.f32.mrf.mxu1 }
 0x628   : > { %v1440_v41 = vpop.f32.mrf.mxu1 }
 0x62a   : > { %v2087_v42 = vpop.f32.mrf.mxu1 }
 0x67a   : > { %v1391_v43 = vpop.f32.mrf.mxu0 }
 0x67b   : > { %v1438_v51 = vadd.f32 %v1437_v39, %v1391_v43 }
 0x67c   : > { %v2080_v45 = vpop.f32.mrf.mxu0 }
 0x67e   : > { %v1394_v46 = vpop.f32.mrf.mxu0 }
 0x680   : > { %v2081_v47 = vpop.f32.mrf.mxu0 }
 0x682   : > { %v1496_v48 = vpop.f32.mrf.mxu0 }
 0x683   : > { %v1502_v53 = vadd.f32 %v1496_v48, %v1438_v51 }
 0x684   : > { %v2092_v49 = vpop.f32.mrf.mxu0 }
 0x686   : > { %v1499_v50 = vpop.f32.mrf.mxu0 }
 0x688   : > { %v2093_v52 = vpop.f32.mrf.mxu0 }
 0x68a   : > { %v1556_v54 = vpop.f32.mrf.mxu1 }
 0x68b   : > { %v1562_v55 = vadd.f32 %v1556_v54, %v1502_v53 }
 0x68c   : > { %v2098_v57 = vpop.f32.mrf.mxu1 }
 0x68d   : > { %v1563_v44 = vadd.f32 %v1562_v55, %v2602_v0  ;;  %v2226_v0 = vld [vmem:[%s2943_s12 + $0x38] sm:$0xff]  }
 0x68e   : > { %v1559_v58 = vpop.f32.mrf.mxu1  ;;  %2109 = vmatpush3.bf16.msra.mxu1 %v2226_v0 }
 0x68f   : > { %v2830_v59 = vadd.f32 %v1950_v56, %v1563_v44  ;;  %2110 = vmatprep.subr.bf16.mxu1 %v2408_v15 }
 0x690   : > { %v2099_v60 = vpop.f32.mrf.mxu1 }
 0x691   : > { %v1575_v61 = vsel %vm559_vm0, %v2830_v59, 0.0 }
 0x692   : > { %1576 = vadd.xlane.f32.xlu1 %v1575_v61  ;;  %2111 = vmatpush3.bf16.msra.mxu1 %v2227_v6 }
 0x693   : > { %2112 = vmatprep.subr.bf16.mxu1 %v2408_v15 }
 0x696   : > { %2113 = vmatpush3.bf16.msra.mxu1 %v2228_v18 }
 0x697   : > { %2114 = vmatprep.subr.bf16.mxu1 %v2408_v15 }
 0x69a   : > { %2115 = vmatpush3.bf16.msra.mxu1 %v2229_v19 }
 0x69b   : > { %2116 = vmatprep.subr.bf16.mxu1 %v2408_v15 }
 0x69e   : > { %2117 = vmatpush3.bf16.msra.mxu1 %v2230_v20 }
 0x69f   : > { %2118 = vmatprep.subr.bf16.mxu1 %v2408_v15 }
 0x6a2   : > { %2119 = vmatpush3.bf16.msra.mxu1 %v2231_v21 }
 0x6a3   : > { %2120 = vmatprep.subr.bf16.mxu1 %v2408_v15 }
 0x6a6   : > { %2121 = vmatpush3.bf16.msra.mxu1 %v2232_v22 }
 0x6a7   : > { %2122 = vmatprep.subr.bf16.mxu1 %v2408_v15 }
 0x6aa   : > { %2123 = vmatpush3.bf16.msra.mxu1 %v2233_v23 }
 0x71b   : > { %v1577_v62 = vpop.xlane.xlu1 %1576 }
 0x71c   : > { %v1579_v63 = vmul.f32 0.03125, %v1577_v62 }
 0x71e   : > { %v1580_v1 = vsub.f32 %v2830_v59, %v1579_v63 }
 0x720   : > { %v1581_v2 = vmul.f32 %v1580_v1, %v1580_v1 }
 0x722   : > { %v1582_v3 = vsel %vm559_vm0, %v1581_v2, 0.0 }
 0x723   : > { %1583 = vadd.xlane.f32.xlu0 %v1582_v3 }
 0x7ac   : > { %v1584_v7 = vpop.xlane.xlu0 %1583 }
 0x7ad   : > { %v1585_v8 = vmul.f32 0.03125, %v1584_v7 }
 0x7af   : > { %v1586_v9 = vadd.f32 1e-05, %v1585_v8 }
 0x7b1   : > { %2262 = vrsqrt.f32 %v1586_v9 }
 0x7be   : > { %v2263_v10 = vpop.eup %2262 }
 0x7bf   : > { %v1588_v12 = vmul.f32 %v2263_v10, %v1580_v1 }
 0x7c1   : > { %v1595_v14 = vmul.f32 %v1951_v11, %v1588_v12 }
 0x7c3   : > { %v1602_v16 = vadd.f32 %v1952_v13, %v1595_v14 }
 0x7c5   : > { %v1603_v17 = vpack.c.bf16 %v1602_v16, %v1602_v16 }
 0x7c7   : > { %2105 = vmatmul.mubr.msk.bf16.vlgmr.msra.gmra.mxu0 %vm559_vm0, %v1603_v17 }
 0x887   : > { %v1664_v25 = vpop.f32.mrf.mxu0 }
 0x888   : > { %v1665_v26 = vadd.f32 %v1953_v24, %v1664_v25 }
 0x889   : > { %v2106_v27 = vpop.f32.mrf.mxu0 }
 0x88a   : > { %v1671_v28 = vmul.f32 0.70710677, %v1665_v26  ;;  %v1670_v32 = vmul.f32 0.5, %v1665_v26 }
 0x88b   : > { %v1667_v29 = vpop.f32.mrf.mxu0 }
 0x88c   : > { %2264 = verf.f32 %v1671_v28 }
 0x88d   : > { %v2107_v30 = vpop.f32.mrf.mxu0 }
 0x899   : > { %v2265_v31 = vpop.eup %2264 }
 0x89a   : > { %v1673_v33 = vadd.f32 1.0, %v2265_v31 }
 0x89c   : > { %v1674_v34 = vmul.f32 %v1673_v33, %v1670_v32 }
 0x89e   : > { %v1675_v15 = vpack.c.bf16 %v1674_v34, %v1674_v34 }
 0x8a0   : > { %2125 = vmatmul.mubr.bf16.vlgmr.msra.gmra.mxu1 %v1675_v15 }
 0x960   : > { %v1781_v36 = vpop.f32.mrf.mxu1 }
 0x961   : > { %v1782_v37 = vadd.f32 %v1957_v35, %v1781_v36 }
 0x962   : > { %v2126_v38 = vpop.f32.mrf.mxu1 }
 0x963   : > { %v1787_v39 = vadd.f32 %v1782_v37, %v2830_v59 }
 0x964   : > { %v1784_v40 = vpop.f32.mrf.mxu1 }
 0x965   : > { %1788 = vst.msk [vmem:[%s536_s20] sm:$0xff] %vm559_vm0, %v1787_v39 }
 0x966   : > { %v2127_v41 = vpop.f32.mrf.mxu1 }
 0x967   : > { %2331 = shalt.err (!%p2328_p12)
}
 0x968   : > { %s2332_s27 = scalar_lea.hbm %s2884_s15, 128  ;;  %s2336_s24 = scalar_lea.hbm %s2945_s14, 256 }
 0x969   : > { %p2333_p1 = scmp.ne.s32.totalorder %s2884_s15, %s2332_s27  ;;  %p2337_p3 = scmp.lt.s32.totalorder %s2884_s15, %s2945_s14 }
 0x96a   : > { %p2338_p6 = scmp.lt.s32.totalorder %s2336_s24, %s2332_s27 }
 0x96b   : > { %p2334_p2 = pnand %p2333_p1, %p2535_p4 }
 0x96c   : > { %p2339_p8 = por %p2338_p6, %p2337_p3 }
 0x96d   : > { %p2335_p5 = pneg %p2334_p2 }
 0x96f   : > { %p2340_p10 = pnand %p2339_p8, %p2335_p5 }
 0x971   : > { %2343 = shalt.err (!%p2340_p10)
}
 0x972   : > { %2136 = dma.vmem_to_hbm [thread:$0]  (%p2535_p4), %s2886_s22, 128, %s2884_s15, %s1790_s16  }
 0x973 PF: > { %s2965_s29 = sld [smem:[#allocation18_spill]] }
 0x974   : > { %s2966_s17 = sld [smem:[#allocation15_spill]] }
 0x975   : > { %s2967_s18 = sld [smem:[#allocation20_spill]] }
 0x979   : > { %p2153_p11 = scmp.ge.s32.totalorder %s2965_s29, 2 }
 0x97a   : > { %s1816_s21 = sand.u32 1, %s2966_s17  }
 0x97b   : > { %p2968_p13 = scmp.ne.s32.totalorder %s2967_s18, 0  ;;  %s1817_s26 = scalar_lea.sflag [#allocation8], %s1816_s21 }
 0x97d   : > { %p2146_p0 = pnand %p2153_p11, %p2968_p13 }
 0x97f   : > { %p2147_p7 = pneg %p2146_p0 }
 0x981   : > { %2377 = dma.done.wait (%p2147_p7), %s1817_s26, 128  }
 0x982   : > { %2379 = vsyncadd (%p2147_p7), %s1817_s26, 4294967168  ;;  %s29_s18 = sadd.s32 1, %s2965_s29   ;;  %s2969_s23 = sld [smem:[#allocation16_spill]] }
 0x983   : > { %p26_p9 = scmp.ge.s32.totalorder %s29_s18, 4   ;;  %s2970_s15 = sld [smem:[#allocation21_spill]] }
 0x984   : > { %s2971_s16 = sld [smem:[#allocation17_spill]]  ;;  %s2973_s29 = smov %s2386_s30 }
 0x985   : > { %s2972_s17 = sld [smem:[#allocation19_spill]]  ;;  %28 = sbr.rel (!%p26_p9) target bundleno = 6 (0x6), region = 150 }
 0x988   : > { %s2974_s30 = smov %s2969_s23 }
 0x98a   :  { %1822 = vsyncpa [#allocation7], 1 }
 0x98b   :  { %1824 = vsyncpa [#allocation7 + $0x1], 1 }
 0x98c   :  { %1825 = vsyncpa [#allocation10], 1 }
 0x98d   :  { %1826 = vsyncpa [#allocation8], 1 }
 0x98e   :  { %1828 = vsyncpa [#allocation8 + $0x1], 1 }

</bundles_post_ra>
